<compile_context>
chip_gen: v6e
topology: v6e:2x2x1
jax: 0.10.0
libtpu: 0.0.40
codegen_flags: <defaults>
</compile_context>

<pallas_src>
from functools import partial

import numpy as np
import jax
import jax.numpy as jnp
from jax.experimental import pallas as pl
from jax.experimental.pallas import tpu as pltpu

# ----------------------------- model hyper-params -----------------------------
NUM_EDGE = 24                                   # kept for parity with __init__
NUM_POS = 8
NUM_EVADER = 3
NUM_ACTION = 3
GRAPH_FEAT = (NUM_EVADER + 1) ** 2              # 16
FC_N1_IN = GRAPH_FEAT + 1 + NUM_POS + NUM_POS   # 33
TOPO_HW = 45                                    # 3x3Traffic map (45 -> 23 -> 8 -> 7)

# conv tower static geometry ('3x3Traffic'):
#   conv1: 1->3 k3 s2 p1 : 45 -> 23   (padded input 47)
#   conv2: 3->3 k4 s3 p1 : 23 -> 8    (padded input 25)
#   conv3: 3->1 k2 s1 p0 : 8  -> 7
_C1 = dict(cin=1, cout=3, k=3, s=2, wp=47, ow=23)
_C2 = dict(cin=3, cout=3, k=4, s=3, wp=25, ow=8)
_C3 = dict(cin=3, cout=1, k=2, s=1, wp=8, ow=7)

_VMEM = pl.BlockSpec(memory_space=pltpu.MemorySpace.VMEM)


# --------------------------- init-time weight prep -----------------------------
def _conv_colmats(w, bias, cfg, ocol_stride=None, ocol_off=0):
    """Fold column taps + column stride + output channels of a conv layer into
    per-kernel-row matrices:

      mats[ki][c*wp + s*j + kj, o*ocol_stride + ocol_off + j] = w[o, c, ki, kj]
      bias_row[0, o*ocol_stride + ocol_off + j] = bias[o]

    so that conv output row i equals
      relu( sum_ki  x_pad[row s*i+ki, :(cin*wp)] @ mats[ki] + bias_row ).
    With ocol_stride/ocol_off, the output columns can be emitted directly in
    the NEXT layer's padded-column layout (pad columns stay exactly 0)."""
    w = np.asarray(w, np.float32)
    cout, cin, k, _ = w.shape
    s, wp, ow = cfg["s"], cfg["wp"], cfg["ow"]
    if ocol_stride is None:
        ocol_stride = ow
    out_w = cout * ocol_stride
    mats = []
    for ki in range(k):
        m = np.zeros((cin * wp, out_w), np.float32)
        for c in range(cin):
            for o in range(cout):
                for j in range(ow):
                    for kj in range(k):
                        m[c * wp + s * j + kj, o * ocol_stride + ocol_off + j] += \
                            w[o, c, ki, kj]
        mats.append(m)
    bias_row = np.zeros((1, out_w), np.float32)
    for o in range(cout):
        for j in range(ow):
            bias_row[0, o * ocol_stride + ocol_off + j] = bias[o]
    return mats, bias_row


def _pack_slab(entries):
    """Pack a list of (name, 2-D array with width<=128) into one (R,128) f32
    slab; every block's first row is aligned to a multiple of 8 sublanes."""
    offsets, blocks, r = {}, [], 0
    for name, arr in entries:
        arr = np.asarray(arr, np.float32)
        h, w = arr.shape
        assert w <= 128, name
        hp = -(-h // 8) * 8
        blk = np.zeros((hp, 128), np.float32)
        blk[:h, :w] = arr
        offsets[name] = (r, h, w)
        blocks.append(blk)
        r += hp
    return jnp.asarray(np.concatenate(blocks, axis=0)), offsets


def init_params(key):
    """PyTorch-style random weights, pre-transformed + packed into one slab.
    Returns (slab, offsets, raw) — `raw` is only used by the pure-JAX check."""
    def lin(k, fan_in, fan_out):
        kw, kb = jax.random.split(k)
        bound = 1.0 / np.sqrt(fan_in)
        w = np.asarray(jax.random.uniform(kw, (fan_in, fan_out), jnp.float32, -bound, bound))
        b = np.asarray(jax.random.uniform(kb, (fan_out,), jnp.float32, -bound, bound))
        return w, b

    def conv(k, o, c, ksz):
        kw, kb = jax.random.split(k)
        fan_in = c * ksz * ksz
        bound = 1.0 / np.sqrt(fan_in)
        w = np.asarray(jax.random.uniform(kw, (o, c, ksz, ksz), jnp.float32, -bound, bound))
        b = np.asarray(jax.random.uniform(kb, (o,), jnp.float32, -bound, bound))
        return w, b

    ks = jax.random.split(key, 9)
    raw = {}
    raw["w_n1"], raw["b_n1"] = lin(ks[0], FC_N1_IN, 32)
    raw["cw1"], raw["cb1"] = conv(ks[1], 3, 1, 3)
    raw["cw2"], raw["cb2"] = conv(ks[2], 3, 3, 4)
    raw["cw3"], raw["cb3"] = conv(ks[3], 1, 3, 2)
    raw["w_link"], raw["b_link"] = lin(ks[4], 49, 24)
    raw["w_hid1"], raw["b_hid1"] = lin(ks[5], 32 + 24, 48)
    raw["w_act"], raw["b_act"] = lin(ks[6], 48, NUM_ACTION)
    # TODO(synk): topoGraph / agentGraph are external modules not defined in
    # DQN_Networks.py; a deterministic tanh-projection stand-in is used.
    raw["w_graph"] = np.asarray(
        0.1 * jax.random.normal(ks[7], (9 * 4 + 9, GRAPH_FEAT), jnp.float32))

    # conv1 emits columns directly in conv2's padded layout (o*25 + 1 + j).
    m1, cb1row = _conv_colmats(raw["cw1"], raw["cb1"], _C1, ocol_stride=25, ocol_off=1)
    m2, cb2row = _conv_colmats(raw["cw2"], raw["cb2"], _C2)     # cols o*8 + j
    m3, cb3row = _conv_colmats(raw["cw3"], raw["cb3"], _C3)     # cols j

    # fc_link weight re-blocked into 7 row-blocks of 7 (each padded to 8 rows so
    # the per-row-tap in-kernel slices stay sublane aligned).
    wl3p = np.zeros((7 * 8, 24), np.float32)
    for i in range(7):
        wl3p[i * 8:i * 8 + 7, :] = raw["w_link"][i * 7:(i + 1) * 7, :]

    entries = []
    entries += [(f"m1_{ki}", m1[ki]) for ki in range(_C1["k"])]
    entries += [(f"m2_{ki}", m2[ki]) for ki in range(_C2["k"])]
    entries += [(f"m3_{ki}", m3[ki]) for ki in range(_C3["k"])]
    entries += [
        ("cb1", cb1row), ("cb2", cb2row), ("cb3", cb3row),
        ("wl3p", wl3p), ("bl", raw["b_link"][None, :]),
        # fc_n1 weight pre-split by the concat([steps, graph, ego, target]) layout
        ("wn1_s", raw["w_n1"][0:1]), ("wn1_g", raw["w_n1"][1:17]),
        ("wn1_e", raw["w_n1"][17:25]), ("wn1_t", raw["w_n1"][25:33]),
        ("bn1", raw["b_n1"][None, :]),
        # fc_hid1 weight pre-split by the concat([feature, topo]) layout
        ("whf", raw["w_hid1"][:32]), ("wht", raw["w_hid1"][32:]),
        ("bh", raw["b_hid1"][None, :]),
        ("wa", raw["w_act"]), ("ba", raw["b_act"][None, :]),
        ("wg_n", raw["w_graph"][:36]), ("wg_t", raw["w_graph"][36:]),
    ]
    slab, offsets = _pack_slab(entries)
    return slab, offsets, raw


# --------------------------------- the kernel ----------------------------------
# Per-batch block layout (all strides multiples of 8 sublanes):
#   x1   : 48 rows/batch ; rows 0..46 = zero-padded 47x47 image, row 47 zero
#   scr2 : 48 rows/batch ; conv2 padded input rows r=0..24 live at block rows
#          7+r  (pad rows 7 & 31 zeroed, data rows 8..30 written by conv1)
#   y2scr: 16 rows/batch ; rows 0..7 valid conv2 output, 8..15 garbage
#   y3scr: 16 rows/batch ; rows 0..6 valid conv3 output, rest garbage
# Garbage rows are only ever read into matmul output rows that are themselves
# discarded, so they never touch the result.
def _dqn_kernel(x1_ref, steps_ref, ego_ref, tgt_ref, node_ref, traffic_ref,
                slab_ref, out_ref, scr2, y2scr, y3scr, *, off, batch):
    f32 = jnp.float32
    B = batch

    def P(name, r0=0, rows=None):
        r, h, w = off[name]
        if rows is None:
            rows = h
        return slab_ref[r + r0:r + r0 + rows, :w]

    def elu(v):
        return jnp.where(v > 0.0, v, jnp.exp(jnp.minimum(v, 0.0)) - 1.0)

    def mdot(a, b):
        return jnp.dot(a, b, preferred_element_type=f32)

    # ---- zero ONLY the padding rows conv2 actually reads (block rows 7 & 31);
    #      rows 24..30 are re-written by the conv1 scatter below. ----
    zero8 = jnp.zeros((8, 75), f32)
    for b in range(B):
        scr2[b * 48:b * 48 + 8, :] = zero8
        scr2[b * 48 + 24:b * 48 + 32, :] = zero8

    # ---- conv1: 1->3, k3, s2, p1 — batch-folded, one matmul per row tap ----
    y1 = None
    for ki in range(3):
        rows = x1_ref[pl.ds(ki, B * 24, stride=2), :]            # (B*24, 47)
        t = mdot(rows, P(f"m1_{ki}"))                            # (B*24, 75)
        y1 = t if y1 is None else y1 + t
    y1 = jnp.maximum(y1 + P("cb1"), 0.0)                         # ReLU
    # scatter the 23 valid rows/batch into conv2's padded scratch:
    # full-width rows (column padding is already exact zeros), 8-aligned start.
    for b in range(B):
        scr2[b * 48 + 8:b * 48 + 31, :] = y1[b * 24:b * 24 + 23, :]

    # ---- conv2: 3->3, k4, s3, p1 — batch-folded ----
    y2 = None
    for ki in range(4):
        rows = scr2[pl.ds(7 + ki, B * 16, stride=3), :]          # (B*16, 75)
        t = mdot(rows, P(f"m2_{ki}"))                            # (B*16, 24)
        y2 = t if y2 is None else y2 + t
    y2 = jnp.maximum(y2 + P("cb2"), 0.0)
    y2scr[0:B * 16, :] = y2                                      # one aligned store

    # ---- conv3: 3->1, k2, s1, p0 — batch-folded (contiguous row loads) ----
    y3 = None
    for ki in range(2):
        t = mdot(y2scr[ki:ki + B * 16, :], P(f"m3_{ki}"))        # (B*16, 7)
        y3 = t if y3 is None else y3 + t
    y3 = jnp.maximum(y3 + P("cb3"), 0.0)
    y3scr[...] = y3

    # ---- fc_link (49 -> 24): 7 batch-wide matmuls (one per conv3 output row) ----
    t = None
    for i in range(7):
        rows = y3scr[pl.ds(i, B, stride=16), :]                  # (B, 7)
        d = mdot(rows, P("wl3p", r0=i * 8, rows=7))              # (B, 24)
        t = d if t is None else t + d
    topo_feat = elu(t + P("bl"))                                 # (B, 24)

    # ------------------------------- batched head -------------------------------
    # TODO(synk): topoGraph / agentGraph are external modules not defined in
    # DQN_Networks.py; a deterministic tanh-projection stand-in is used instead.
    graph = jnp.tanh(mdot(node_ref[...], P("wg_n"))
                     + mdot(traffic_ref[...], P("wg_t")))        # (B, 16)
    feature = elu(steps_ref[...] * P("wn1_s")                    # (B,1)*(1,32)
                  + mdot(graph, P("wn1_g"))
                  + mdot(ego_ref[...], P("wn1_e"))
                  + mdot(tgt_ref[...], P("wn1_t"))
                  + P("bn1"))                                    # (B, 32)
    hid = elu(mdot(feature, P("whf")) + mdot(topo_feat, P("wht")) + P("bh"))  # (B,48)
    logits = mdot(hid, P("wa")) + P("ba")
    z = logits - jnp.max(logits, axis=-1, keepdims=True)
    e = jnp.exp(z)
    out_ref[...] = e / jnp.sum(e, axis=-1, keepdims=True)        # exact softmax


# --------------------------------- the wrapper ----------------------------------
def make_forward(offsets):
    """Returns a jitted forward(slab, steps, target_pos, ego_pos,
    topo_link_array, traffic_state, node_feature) -> (B, NUM_ACTION)."""
    def fwd(slab, steps, target_pos, ego_pos, topo_link_array, traffic_state,
            node_feature):
        b = steps.shape[0]
        topo = jnp.asarray(topo_link_array, jnp.float32).reshape(b, TOPO_HW, TOPO_HW)
        # conv1 zero-padding done here (wrapper), laid out as 48-row per-batch
        # blocks + 8 tail rows so the in-kernel strided loads stay in bounds.
        x1 = jnp.pad(topo, ((0, 0), (1, 2), (1, 1)))             # (b, 48, 47)
        x1 = x1.reshape(b * 48, 47)
        x1 = jnp.pad(x1, ((0, 8), (0, 0)))                       # (b*48+8, 47)
        node_flat = jnp.asarray(node_feature, jnp.float32).reshape(b, -1)
        kern = partial(_dqn_kernel, off=offsets, batch=b)
        return pl.pallas_call(
            kern,
            out_shape=jax.ShapeDtypeStruct((b, NUM_ACTION), jnp.float32),
            in_specs=[_VMEM] * 7,
            out_specs=_VMEM,
            scratch_shapes=[
                pltpu.VMEM((b * 48 + 8, 75), jnp.float32),   # conv2 padded input
                pltpu.VMEM((b * 16 + 8, 24), jnp.float32),   # conv2 output
                pltpu.VMEM((b * 16, 7), jnp.float32),        # conv3 output
            ],
        )(x1, jnp.asarray(steps, jnp.float32), jnp.asarray(ego_pos, jnp.float32),
          jnp.asarray(target_pos, jnp.float32), node_flat,
          jnp.asarray(traffic_state, jnp.float32), slab)
    return jax.jit(fwd)


# -------------------------- pure-JAX reference (check) ---------------------------
def ref_forward(raw, steps, target_pos, ego_pos, topo_link_array, traffic_state,
                node_feature):
    b = steps.shape[0]

    def conv(x, w, bias, s, p):
        y = jax.lax.conv_general_dilated(
            x, jnp.asarray(w), (s, s), [(p, p), (p, p)],
            dimension_numbers=("NCHW", "OIHW", "NCHW"))
        return jax.nn.relu(y + jnp.asarray(bias)[None, :, None, None])

    graph_in = jnp.concatenate(
        [node_feature.reshape(b, -1), traffic_state.reshape(b, -1)], axis=1)
    graph_flat = jnp.tanh(graph_in @ raw["w_graph"])
    all_input = jnp.concatenate([steps, graph_flat, ego_pos, target_pos], axis=1)
    feature = jax.nn.elu(all_input @ raw["w_n1"] + raw["b_n1"])

    t = conv(topo_link_array, raw["cw1"], raw["cb1"], 2, 1)
    t = conv(t, raw["cw2"], raw["cb2"], 3, 1)
    t = conv(t, raw["cw3"], raw["cb3"], 1, 0)
    topo = jax.nn.elu(t.reshape(b, 49) @ raw["w_link"] + raw["b_link"])

    hid = jax.nn.elu(jnp.concatenate([feature, topo], axis=1) @ raw["w_hid1"]
                     + raw["b_hid1"])
    return jax.nn.softmax(hid @ raw["w_act"] + raw["b_act"], axis=1)


if __name__ == "__main__":
    key = jax.random.PRNGKey(0)
    kp, k1, k2, k3, k4, k5, k6 = jax.random.split(key, 7)

    B = 2
    slab, offsets, raw = init_params(kp)
    forward = make_forward(offsets)

    steps = jax.random.uniform(k1, (B, 1), jnp.float32)
    target_pos = jax.random.uniform(k2, (B, NUM_POS), jnp.float32)
    ego_pos = jax.random.uniform(k3, (B, NUM_POS), jnp.float32)
    topo_link_array = jax.random.uniform(k4, (B, 1, TOPO_HW, TOPO_HW), jnp.float32)
    traffic_state = jax.random.uniform(k5, (B, 9), jnp.float32)
    node_feature = jax.random.uniform(k6, (B, 9, 4), jnp.float32)

    q = forward(slab, steps, target_pos, ego_pos, topo_link_array, traffic_state,
                node_feature)
    q = jax.block_until_ready(q)

    assert q.shape == (B, NUM_ACTION)
    # exact softmax normalization now -> tight sum-to-1 check
    assert bool(jnp.allclose(jnp.sum(q, axis=1), 1.0, atol=1e-5))

    # Comparison vs the XLA reference; residual tolerance only covers default
    # f32 matmul/conv precision differences between XLA and the MXU kernel.
    q_ref = ref_forward(raw, steps, target_pos, ego_pos, topo_link_array,
                        traffic_state, node_feature)
    assert bool(jnp.allclose(q, q_ref, atol=2e-2)), \
        "fused Pallas forward diverges from the pure-JAX reference"

    print("KERNEL_OK")
</pallas_src>

<mosaic_0001>
module attributes {stable_mosaic.version = 11 : i64} {
  func.func @_dqn_kernel(%arg0: memref<104x47xf32, #tpu.memory_space<vmem>>, %arg1: memref<2x1xf32, #tpu.memory_space<vmem>>, %arg2: memref<2x8xf32, #tpu.memory_space<vmem>>, %arg3: memref<2x8xf32, #tpu.memory_space<vmem>>, %arg4: memref<2x36xf32, #tpu.memory_space<vmem>>, %arg5: memref<2x9xf32, #tpu.memory_space<vmem>>, %arg6: memref<824x128xf32, #tpu.memory_space<vmem>>, %arg7: memref<2x3xf32, #tpu.memory_space<vmem>>, %arg8: memref<104x75xf32, #tpu.memory_space<vmem>>, %arg9: memref<40x24xf32, #tpu.memory_space<vmem>>, %arg10: memref<32x7xf32, #tpu.memory_space<vmem>>) attributes {dimension_semantics = [], scalar_prefetch = 0 : i64, scratch_operands = 3 : i64, tpu.core_type = #tpu.core_type<tc>} {
    %cst = arith.constant 0.000000e+00 : f32
    %0 = vector.broadcast %cst : f32 to vector<8x75xf32>
    %c0 = arith.constant 0 : index
    %c0_0 = arith.constant 0 : index
    %1 = vector.load %arg8[%c0, %c0_0] : memref<104x75xf32, #tpu.memory_space<vmem>>, vector<8x75xf32>
    tpu.vector_store %arg8[%c0, %c0_0], %0 {strides = array<i32>} : memref<104x75xf32, #tpu.memory_space<vmem>>, vector<8x75xf32>,
    %c24 = arith.constant 24 : index
    %c0_1 = arith.constant 0 : index
    %2 = vector.load %arg8[%c24, %c0_1] : memref<104x75xf32, #tpu.memory_space<vmem>>, vector<8x75xf32>
    tpu.vector_store %arg8[%c24, %c0_1], %0 {strides = array<i32>} : memref<104x75xf32, #tpu.memory_space<vmem>>, vector<8x75xf32>,
    %c48 = arith.constant 48 : index
    %c0_2 = arith.constant 0 : index
    %3 = vector.load %arg8[%c48, %c0_2] : memref<104x75xf32, #tpu.memory_space<vmem>>, vector<8x75xf32>
    tpu.vector_store %arg8[%c48, %c0_2], %0 {strides = array<i32>} : memref<104x75xf32, #tpu.memory_space<vmem>>, vector<8x75xf32>,
    %c72 = arith.constant 72 : index
    %c0_3 = arith.constant 0 : index
    %4 = vector.load %arg8[%c72, %c0_3] : memref<104x75xf32, #tpu.memory_space<vmem>>, vector<8x75xf32>
    tpu.vector_store %arg8[%c72, %c0_3], %0 {strides = array<i32>} : memref<104x75xf32, #tpu.memory_space<vmem>>, vector<8x75xf32>,
    %c0_4 = arith.constant 0 : index
    %c0_5 = arith.constant 0 : index
    %5 = tpu.strided_load %arg0[%c0_4, %c0_5] {strides = array<i32: 2, 1>} : memref<104x47xf32, #tpu.memory_space<vmem>>, vector<48x47xf32>
    %c0_6 = arith.constant 0 : index
    %c0_7 = arith.constant 0 : index
    %6 = vector.load %arg6[%c0_6, %c0_7] : memref<824x128xf32, #tpu.memory_space<vmem>>, vector<47x75xf32>
    %cst_8 = arith.constant dense<0.000000e+00> : vector<48x75xf32>
    %7 = tpu.matmul %5, %6, %cst_8 {dimension_numbers = #tpu.dot_dimension_numbers<[1], [0], [0], [1], [0, 0, 1, 1], [], []>} : vector<48x47xf32>, vector<47x75xf32>, vector<48x75xf32> -> vector<48x75xf32>
    %c1 = arith.constant 1 : index
    %c0_9 = arith.constant 0 : index
    %8 = tpu.strided_load %arg0[%c1, %c0_9] {strides = array<i32: 2, 1>} : memref<104x47xf32, #tpu.memory_space<vmem>>, vector<48x47xf32>
    %c48_10 = arith.constant 48 : index
    %c0_11 = arith.constant 0 : index
    %9 = vector.load %arg6[%c48_10, %c0_11] : memref<824x128xf32, #tpu.memory_space<vmem>>, vector<47x75xf32>
    %cst_12 = arith.constant dense<0.000000e+00> : vector<48x75xf32>
    %10 = tpu.matmul %8, %9, %cst_12 {dimension_numbers = #tpu.dot_dimension_numbers<[1], [0], [0], [1], [0, 0, 1, 1], [], []>} : vector<48x47xf32>, vector<47x75xf32>, vector<48x75xf32> -> vector<48x75xf32>
    %11 = arith.addf %7, %10 : vector<48x75xf32>
    %c2 = arith.constant 2 : index
    %c0_13 = arith.constant 0 : index
    %12 = tpu.strided_load %arg0[%c2, %c0_13] {strides = array<i32: 2, 1>} : memref<104x47xf32, #tpu.memory_space<vmem>>, vector<48x47xf32>
    %c96 = arith.constant 96 : index
    %c0_14 = arith.constant 0 : index
    %13 = vector.load %arg6[%c96, %c0_14] : memref<824x128xf32, #tpu.memory_space<vmem>>, vector<47x75xf32>
    %cst_15 = arith.constant dense<0.000000e+00> : vector<48x75xf32>
    %14 = tpu.matmul %12, %13, %cst_15 {dimension_numbers = #tpu.dot_dimension_numbers<[1], [0], [0], [1], [0, 0, 1, 1], [], []>} : vector<48x47xf32>, vector<47x75xf32>, vector<48x75xf32> -> vector<48x75xf32>
    %15 = arith.addf %11, %14 : vector<48x75xf32>
    %c512 = arith.constant 512 : index
    %c0_16 = arith.constant 0 : index
    %16 = vector.load %arg6[%c512, %c0_16] : memref<824x128xf32, #tpu.memory_space<vmem>>, vector<1x75xf32>
    %17 = vector.broadcast %16 : vector<1x75xf32> to vector<48x75xf32>
    %18 = arith.addf %15, %17 : vector<48x75xf32>
    %cst_17 = arith.constant 0.000000e+00 : f32
    %19 = vector.broadcast %cst_17 : f32 to vector<48x75xf32>
    %20 = arith.maximumf %18, %19 : vector<48x75xf32>
    %21 = vector.extract_strided_slice %20 {offsets = [0, 0], sizes = [23, 75], strides = [1, 1]} : vector<48x75xf32> to vector<23x75xf32>
    %c8 = arith.constant 8 : index
    %c0_18 = arith.constant 0 : index
    %22 = vector.load %arg8[%c8, %c0_18] : memref<104x75xf32, #tpu.memory_space<vmem>>, vector<23x75xf32>
    tpu.vector_store %arg8[%c8, %c0_18], %21 {strides = array<i32>} : memref<104x75xf32, #tpu.memory_space<vmem>>, vector<23x75xf32>,
    %23 = vector.extract_strided_slice %20 {offsets = [24, 0], sizes = [23, 75], strides = [1, 1]} : vector<48x75xf32> to vector<23x75xf32>
    %c56 = arith.constant 56 : index
    %c0_19 = arith.constant 0 : index
    %24 = vector.load %arg8[%c56, %c0_19] : memref<104x75xf32, #tpu.memory_space<vmem>>, vector<23x75xf32>
    tpu.vector_store %arg8[%c56, %c0_19], %23 {strides = array<i32>} : memref<104x75xf32, #tpu.memory_space<vmem>>, vector<23x75xf32>,
    %c7 = arith.constant 7 : index
    %c0_20 = arith.constant 0 : index
    %25 = tpu.strided_load %arg8[%c7, %c0_20] {strides = array<i32: 3, 1>} : memref<104x75xf32, #tpu.memory_space<vmem>>, vector<32x75xf32>
    %c144 = arith.constant 144 : index
    %c0_21 = arith.constant 0 : index
    %26 = vector.load %arg6[%c144, %c0_21] : memref<824x128xf32, #tpu.memory_space<vmem>>, vector<75x24xf32>
    %cst_22 = arith.constant dense<0.000000e+00> : vector<32x24xf32>
    %27 = tpu.matmul %25, %26, %cst_22 {dimension_numbers = #tpu.dot_dimension_numbers<[1], [0], [0], [1], [0, 0, 1, 1], [], []>} : vector<32x75xf32>, vector<75x24xf32>, vector<32x24xf32> -> vector<32x24xf32>
    %c8_23 = arith.constant 8 : index
    %c0_24 = arith.constant 0 : index
    %28 = tpu.strided_load %arg8[%c8_23, %c0_24] {strides = array<i32: 3, 1>} : memref<104x75xf32, #tpu.memory_space<vmem>>, vector<32x75xf32>
    %c224 = arith.constant 224 : index
    %c0_25 = arith.constant 0 : index
    %29 = vector.load %arg6[%c224, %c0_25] : memref<824x128xf32, #tpu.memory_space<vmem>>, vector<75x24xf32>
    %cst_26 = arith.constant dense<0.000000e+00> : vector<32x24xf32>
    %30 = tpu.matmul %28, %29, %cst_26 {dimension_numbers = #tpu.dot_dimension_numbers<[1], [0], [0], [1], [0, 0, 1, 1], [], []>} : vector<32x75xf32>, vector<75x24xf32>, vector<32x24xf32> -> vector<32x24xf32>
    %31 = arith.addf %27, %30 : vector<32x24xf32>
    %c9 = arith.constant 9 : index
    %c0_27 = arith.constant 0 : index
    %32 = tpu.strided_load %arg8[%c9, %c0_27] {strides = array<i32: 3, 1>} : memref<104x75xf32, #tpu.memory_space<vmem>>, vector<32x75xf32>
    %c304 = arith.constant 304 : index
    %c0_28 = arith.constant 0 : index
    %33 = vector.load %arg6[%c304, %c0_28] : memref<824x128xf32, #tpu.memory_space<vmem>>, vector<75x24xf32>
    %cst_29 = arith.constant dense<0.000000e+00> : vector<32x24xf32>
    %34 = tpu.matmul %32, %33, %cst_29 {dimension_numbers = #tpu.dot_dimension_numbers<[1], [0], [0], [1], [0, 0, 1, 1], [], []>} : vector<32x75xf32>, vector<75x24xf32>, vector<32x24xf32> -> vector<32x24xf32>
    %35 = arith.addf %31, %34 : vector<32x24xf32>
    %c10 = arith.constant 10 : index
    %c0_30 = arith.constant 0 : index
    %36 = tpu.strided_load %arg8[%c10, %c0_30] {strides = array<i32: 3, 1>} : memref<104x75xf32, #tpu.memory_space<vmem>>, vector<32x75xf32>
    %c384 = arith.constant 384 : index
    %c0_31 = arith.constant 0 : index
    %37 = vector.load %arg6[%c384, %c0_31] : memref<824x128xf32, #tpu.memory_space<vmem>>, vector<75x24xf32>
    %cst_32 = arith.constant dense<0.000000e+00> : vector<32x24xf32>
    %38 = tpu.matmul %36, %37, %cst_32 {dimension_numbers = #tpu.dot_dimension_numbers<[1], [0], [0], [1], [0, 0, 1, 1], [], []>} : vector<32x75xf32>, vector<75x24xf32>, vector<32x24xf32> -> vector<32x24xf32>
    %39 = arith.addf %35, %38 : vector<32x24xf32>
    %c520 = arith.constant 520 : index
    %c0_33 = arith.constant 0 : index
    %40 = vector.load %arg6[%c520, %c0_33] : memref<824x128xf32, #tpu.memory_space<vmem>>, vector<1x24xf32>
    %41 = vector.broadcast %40 : vector<1x24xf32> to vector<32x24xf32>
    %42 = arith.addf %39, %41 : vector<32x24xf32>
    %cst_34 = arith.constant 0.000000e+00 : f32
    %43 = vector.broadcast %cst_34 : f32 to vector<32x24xf32>
    %44 = arith.maximumf %42, %43 : vector<32x24xf32>
    %c0_35 = arith.constant 0 : index
    %c0_36 = arith.constant 0 : index
    %45 = vector.load %arg9[%c0_35, %c0_36] : memref<40x24xf32, #tpu.memory_space<vmem>>, vector<32x24xf32>
    tpu.vector_store %arg9[%c0_35, %c0_36], %44 {strides = array<i32>} : memref<40x24xf32, #tpu.memory_space<vmem>>, vector<32x24xf32>,
    %c0_37 = arith.constant 0 : index
    %c0_38 = arith.constant 0 : index
    %46 = vector.load %arg9[%c0_37, %c0_38] : memref<40x24xf32, #tpu.memory_space<vmem>>, vector<32x24xf32>
    %c464 = arith.constant 464 : index
    %c0_39 = arith.constant 0 : index
    %47 = vector.load %arg6[%c464, %c0_39] : memref<824x128xf32, #tpu.memory_space<vmem>>, vector<24x7xf32>
    %cst_40 = arith.constant dense<0.000000e+00> : vector<32x7xf32>
    %48 = tpu.matmul %46, %47, %cst_40 {dimension_numbers = #tpu.dot_dimension_numbers<[1], [0], [0], [1], [0, 0, 1, 1], [], []>} : vector<32x24xf32>, vector<24x7xf32>, vector<32x7xf32> -> vector<32x7xf32>
    %c1_41 = arith.constant 1 : index
    %c0_42 = arith.constant 0 : index
    %49 = vector.load %arg9[%c1_41, %c0_42] : memref<40x24xf32, #tpu.memory_space<vmem>>, vector<32x24xf32>
    %c488 = arith.constant 488 : index
    %c0_43 = arith.constant 0 : index
    %50 = vector.load %arg6[%c488, %c0_43] : memref<824x128xf32, #tpu.memory_space<vmem>>, vector<24x7xf32>
    %cst_44 = arith.constant dense<0.000000e+00> : vector<32x7xf32>
    %51 = tpu.matmul %49, %50, %cst_44 {dimension_numbers = #tpu.dot_dimension_numbers<[1], [0], [0], [1], [0, 0, 1, 1], [], []>} : vector<32x24xf32>, vector<24x7xf32>, vector<32x7xf32> -> vector<32x7xf32>
    %52 = arith.addf %48, %51 : vector<32x7xf32>
    %c528 = arith.constant 528 : index
    %c0_45 = arith.constant 0 : index
    %53 = vector.load %arg6[%c528, %c0_45] : memref<824x128xf32, #tpu.memory_space<vmem>>, vector<1x7xf32>
    %54 = vector.broadcast %53 : vector<1x7xf32> to vector<32x7xf32>
    %55 = arith.addf %52, %54 : vector<32x7xf32>
    %cst_46 = arith.constant 0.000000e+00 : f32
    %56 = vector.broadcast %cst_46 : f32 to vector<32x7xf32>
    %57 = arith.maximumf %55, %56 : vector<32x7xf32>
    %c0_47 = arith.constant 0 : index
    %c0_48 = arith.constant 0 : index
    %58 = vector.load %arg10[%c0_47, %c0_48] : memref<32x7xf32, #tpu.memory_space<vmem>>, vector<32x7xf32>
    tpu.vector_store %arg10[%c0_47, %c0_48], %57 {strides = array<i32>} : memref<32x7xf32, #tpu.memory_space<vmem>>, vector<32x7xf32>,
    %c0_49 = arith.constant 0 : index
    %c0_50 = arith.constant 0 : index
    %59 = tpu.strided_load %arg10[%c0_49, %c0_50] {strides = array<i32: 16, 1>} : memref<32x7xf32, #tpu.memory_space<vmem>>, vector<2x7xf32>
    %c536 = arith.constant 536 : index
    %c0_51 = arith.constant 0 : index
    %60 = vector.load %arg6[%c536, %c0_51] : memref<824x128xf32, #tpu.memory_space<vmem>>, vector<7x24xf32>
    %cst_52 = arith.constant dense<0.000000e+00> : vector<2x24xf32>
    %61 = tpu.matmul %59, %60, %cst_52 {dimension_numbers = #tpu.dot_dimension_numbers<[1], [0], [0], [1], [0, 0, 1, 1], [], []>} : vector<2x7xf32>, vector<7x24xf32>, vector<2x24xf32> -> vector<2x24xf32>
    %c1_53 = arith.constant 1 : index
    %c0_54 = arith.constant 0 : index
    %62 = tpu.strided_load %arg10[%c1_53, %c0_54] {strides = array<i32: 16, 1>} : memref<32x7xf32, #tpu.memory_space<vmem>>, vector<2x7xf32>
    %c544 = arith.constant 544 : index
    %c0_55 = arith.constant 0 : index
    %63 = vector.load %arg6[%c544, %c0_55] : memref<824x128xf32, #tpu.memory_space<vmem>>, vector<7x24xf32>
    %cst_56 = arith.constant dense<0.000000e+00> : vector<2x24xf32>
    %64 = tpu.matmul %62, %63, %cst_56 {dimension_numbers = #tpu.dot_dimension_numbers<[1], [0], [0], [1], [0, 0, 1, 1], [], []>} : vector<2x7xf32>, vector<7x24xf32>, vector<2x24xf32> -> vector<2x24xf32>
    %65 = arith.addf %61, %64 : vector<2x24xf32>
    %c2_57 = arith.constant 2 : index
    %c0_58 = arith.constant 0 : index
    %66 = tpu.strided_load %arg10[%c2_57, %c0_58] {strides = array<i32: 16, 1>} : memref<32x7xf32, #tpu.memory_space<vmem>>, vector<2x7xf32>
    %c552 = arith.constant 552 : index
    %c0_59 = arith.constant 0 : index
    %67 = vector.load %arg6[%c552, %c0_59] : memref<824x128xf32, #tpu.memory_space<vmem>>, vector<7x24xf32>
    %cst_60 = arith.constant dense<0.000000e+00> : vector<2x24xf32>
    %68 = tpu.matmul %66, %67, %cst_60 {dimension_numbers = #tpu.dot_dimension_numbers<[1], [0], [0], [1], [0, 0, 1, 1], [], []>} : vector<2x7xf32>, vector<7x24xf32>, vector<2x24xf32> -> vector<2x24xf32>
    %69 = arith.addf %65, %68 : vector<2x24xf32>
    %c3 = arith.constant 3 : index
    %c0_61 = arith.constant 0 : index
    %70 = tpu.strided_load %arg10[%c3, %c0_61] {strides = array<i32: 16, 1>} : memref<32x7xf32, #tpu.memory_space<vmem>>, vector<2x7xf32>
    %c560 = arith.constant 560 : index
    %c0_62 = arith.constant 0 : index
    %71 = vector.load %arg6[%c560, %c0_62] : memref<824x128xf32, #tpu.memory_space<vmem>>, vector<7x24xf32>
    %cst_63 = arith.constant dense<0.000000e+00> : vector<2x24xf32>
    %72 = tpu.matmul %70, %71, %cst_63 {dimension_numbers = #tpu.dot_dimension_numbers<[1], [0], [0], [1], [0, 0, 1, 1], [], []>} : vector<2x7xf32>, vector<7x24xf32>, vector<2x24xf32> -> vector<2x24xf32>
    %73 = arith.addf %69, %72 : vector<2x24xf32>
    %c4 = arith.constant 4 : index
    %c0_64 = arith.constant 0 : index
    %74 = tpu.strided_load %arg10[%c4, %c0_64] {strides = array<i32: 16, 1>} : memref<32x7xf32, #tpu.memory_space<vmem>>, vector<2x7xf32>
    %c568 = arith.constant 568 : index
    %c0_65 = arith.constant 0 : index
    %75 = vector.load %arg6[%c568, %c0_65] : memref<824x128xf32, #tpu.memory_space<vmem>>, vector<7x24xf32>
    %cst_66 = arith.constant dense<0.000000e+00> : vector<2x24xf32>
    %76 = tpu.matmul %74, %75, %cst_66 {dimension_numbers = #tpu.dot_dimension_numbers<[1], [0], [0], [1], [0, 0, 1, 1], [], []>} : vector<2x7xf32>, vector<7x24xf32>, vector<2x24xf32> -> vector<2x24xf32>
    %77 = arith.addf %73, %76 : vector<2x24xf32>
    %c5 = arith.constant 5 : index
    %c0_67 = arith.constant 0 : index
    %78 = tpu.strided_load %arg10[%c5, %c0_67] {strides = array<i32: 16, 1>} : memref<32x7xf32, #tpu.memory_space<vmem>>, vector<2x7xf32>
    %c576 = arith.constant 576 : index
    %c0_68 = arith.constant 0 : index
    %79 = vector.load %arg6[%c576, %c0_68] : memref<824x128xf32, #tpu.memory_space<vmem>>, vector<7x24xf32>
    %cst_69 = arith.constant dense<0.000000e+00> : vector<2x24xf32>
    %80 = tpu.matmul %78, %79, %cst_69 {dimension_numbers = #tpu.dot_dimension_numbers<[1], [0], [0], [1], [0, 0, 1, 1], [], []>} : vector<2x7xf32>, vector<7x24xf32>, vector<2x24xf32> -> vector<2x24xf32>
    %81 = arith.addf %77, %80 : vector<2x24xf32>
    %c6 = arith.constant 6 : index
    %c0_70 = arith.constant 0 : index
    %82 = tpu.strided_load %arg10[%c6, %c0_70] {strides = array<i32: 16, 1>} : memref<32x7xf32, #tpu.memory_space<vmem>>, vector<2x7xf32>
    %c584 = arith.constant 584 : index
    %c0_71 = arith.constant 0 : index
    %83 = vector.load %arg6[%c584, %c0_71] : memref<824x128xf32, #tpu.memory_space<vmem>>, vector<7x24xf32>
    %cst_72 = arith.constant dense<0.000000e+00> : vector<2x24xf32>
    %84 = tpu.matmul %82, %83, %cst_72 {dimension_numbers = #tpu.dot_dimension_numbers<[1], [0], [0], [1], [0, 0, 1, 1], [], []>} : vector<2x7xf32>, vector<7x24xf32>, vector<2x24xf32> -> vector<2x24xf32>
    %85 = arith.addf %81, %84 : vector<2x24xf32>
    %c592 = arith.constant 592 : index
    %c0_73 = arith.constant 0 : index
    %86 = vector.load %arg6[%c592, %c0_73] : memref<824x128xf32, #tpu.memory_space<vmem>>, vector<1x24xf32>
    %87 = vector.broadcast %86 : vector<1x24xf32> to vector<2x24xf32>
    %88 = arith.addf %85, %87 : vector<2x24xf32>
    %cst_74 = arith.constant 0.000000e+00 : f32
    %89 = vector.broadcast %cst_74 : f32 to vector<2x24xf32>
    %90 = arith.cmpf ogt, %88, %89 : vector<2x24xf32>
    %cst_75 = arith.constant 0.000000e+00 : f32
    %91 = vector.broadcast %cst_75 : f32 to vector<2x24xf32>
    %92 = arith.minimumf %88, %91 : vector<2x24xf32>
    %93 = math.exp %92 : vector<2x24xf32>
    %cst_76 = arith.constant 1.000000e+00 : f32
    %94 = vector.broadcast %cst_76 : f32 to vector<2x24xf32>
    %95 = arith.subf %93, %94 : vector<2x24xf32>
    %96 = arith.select %90, %88, %95 : vector<2x24xi1>, vector<2x24xf32>
    %c0_77 = arith.constant 0 : index
    %c0_78 = arith.constant 0 : index
    %97 = vector.load %arg4[%c0_77, %c0_78] : memref<2x36xf32, #tpu.memory_space<vmem>>, vector<2x36xf32>
    %c768 = arith.constant 768 : index
    %c0_79 = arith.constant 0 : index
    %98 = vector.load %arg6[%c768, %c0_79] : memref<824x128xf32, #tpu.memory_space<vmem>>, vector<36x16xf32>
    %cst_80 = arith.constant dense<0.000000e+00> : vector<2x16xf32>
    %99 = tpu.matmul %97, %98, %cst_80 {dimension_numbers = #tpu.dot_dimension_numbers<[1], [0], [0], [1], [0, 0, 1, 1], [], []>} : vector<2x36xf32>, vector<36x16xf32>, vector<2x16xf32> -> vector<2x16xf32>
    %c0_81 = arith.constant 0 : index
    %c0_82 = arith.constant 0 : index
    %100 = vector.load %arg5[%c0_81, %c0_82] : memref<2x9xf32, #tpu.memory_space<vmem>>, vector<2x9xf32>
    %c808 = arith.constant 808 : index
    %c0_83 = arith.constant 0 : index
    %101 = vector.load %arg6[%c808, %c0_83] : memref<824x128xf32, #tpu.memory_space<vmem>>, vector<9x16xf32>
    %cst_84 = arith.constant dense<0.000000e+00> : vector<2x16xf32>
    %102 = tpu.matmul %100, %101, %cst_84 {dimension_numbers = #tpu.dot_dimension_numbers<[1], [0], [0], [1], [0, 0, 1, 1], [], []>} : vector<2x9xf32>, vector<9x16xf32>, vector<2x16xf32> -> vector<2x16xf32>
    %103 = arith.addf %99, %102 : vector<2x16xf32>
    %104 = math.tanh %103 : vector<2x16xf32>
    %c0_85 = arith.constant 0 : index
    %c0_86 = arith.constant 0 : index
    %105 = vector.load %arg1[%c0_85, %c0_86] : memref<2x1xf32, #tpu.memory_space<vmem>>, vector<2x1xf32>
    %c600 = arith.constant 600 : index
    %c0_87 = arith.constant 0 : index
    %106 = vector.load %arg6[%c600, %c0_87] : memref<824x128xf32, #tpu.memory_space<vmem>>, vector<1x32xf32>
    %107 = vector.broadcast %105 : vector<2x1xf32> to vector<2x32xf32>
    %108 = vector.broadcast %106 : vector<1x32xf32> to vector<2x32xf32>
    %109 = arith.mulf %107, %108 : vector<2x32xf32>
    %c608 = arith.constant 608 : index
    %c0_88 = arith.constant 0 : index
    %110 = vector.load %arg6[%c608, %c0_88] : memref<824x128xf32, #tpu.memory_space<vmem>>, vector<16x32xf32>
    %cst_89 = arith.constant dense<0.000000e+00> : vector<2x32xf32>
    %111 = tpu.matmul %104, %110, %cst_89 {dimension_numbers = #tpu.dot_dimension_numbers<[1], [0], [0], [1], [0, 0, 1, 1], [], []>} : vector<2x16xf32>, vector<16x32xf32>, vector<2x32xf32> -> vector<2x32xf32>
    %112 = arith.addf %109, %111 : vector<2x32xf32>
    %c0_90 = arith.constant 0 : index
    %c0_91 = arith.constant 0 : index
    %113 = vector.load %arg2[%c0_90, %c0_91] : memref<2x8xf32, #tpu.memory_space<vmem>>, vector<2x8xf32>
    %c624 = arith.constant 624 : index
    %c0_92 = arith.constant 0 : index
    %114 = vector.load %arg6[%c624, %c0_92] : memref<824x128xf32, #tpu.memory_space<vmem>>, vector<8x32xf32>
    %cst_93 = arith.constant dense<0.000000e+00> : vector<2x32xf32>
    %115 = tpu.matmul %113, %114, %cst_93 {dimension_numbers = #tpu.dot_dimension_numbers<[1], [0], [0], [1], [0, 0, 1, 1], [], []>} : vector<2x8xf32>, vector<8x32xf32>, vector<2x32xf32> -> vector<2x32xf32>
    %116 = arith.addf %112, %115 : vector<2x32xf32>
    %c0_94 = arith.constant 0 : index
    %c0_95 = arith.constant 0 : index
    %117 = vector.load %arg3[%c0_94, %c0_95] : memref<2x8xf32, #tpu.memory_space<vmem>>, vector<2x8xf32>
    %c632 = arith.constant 632 : index
    %c0_96 = arith.constant 0 : index
    %118 = vector.load %arg6[%c632, %c0_96] : memref<824x128xf32, #tpu.memory_space<vmem>>, vector<8x32xf32>
    %cst_97 = arith.constant dense<0.000000e+00> : vector<2x32xf32>
    %119 = tpu.matmul %117, %118, %cst_97 {dimension_numbers = #tpu.dot_dimension_numbers<[1], [0], [0], [1], [0, 0, 1, 1], [], []>} : vector<2x8xf32>, vector<8x32xf32>, vector<2x32xf32> -> vector<2x32xf32>
    %120 = arith.addf %116, %119 : vector<2x32xf32>
    %c640 = arith.constant 640 : index
    %c0_98 = arith.constant 0 : index
    %121 = vector.load %arg6[%c640, %c0_98] : memref<824x128xf32, #tpu.memory_space<vmem>>, vector<1x32xf32>
    %122 = vector.broadcast %121 : vector<1x32xf32> to vector<2x32xf32>
    %123 = arith.addf %120, %122 : vector<2x32xf32>
    %cst_99 = arith.constant 0.000000e+00 : f32
    %124 = vector.broadcast %cst_99 : f32 to vector<2x32xf32>
    %125 = arith.cmpf ogt, %123, %124 : vector<2x32xf32>
    %cst_100 = arith.constant 0.000000e+00 : f32
    %126 = vector.broadcast %cst_100 : f32 to vector<2x32xf32>
    %127 = arith.minimumf %123, %126 : vector<2x32xf32>
    %128 = math.exp %127 : vector<2x32xf32>
    %cst_101 = arith.constant 1.000000e+00 : f32
    %129 = vector.broadcast %cst_101 : f32 to vector<2x32xf32>
    %130 = arith.subf %128, %129 : vector<2x32xf32>
    %131 = arith.select %125, %123, %130 : vector<2x32xi1>, vector<2x32xf32>
    %c648 = arith.constant 648 : index
    %c0_102 = arith.constant 0 : index
    %132 = vector.load %arg6[%c648, %c0_102] : memref<824x128xf32, #tpu.memory_space<vmem>>, vector<32x48xf32>
    %cst_103 = arith.constant dense<0.000000e+00> : vector<2x48xf32>
    %133 = tpu.matmul %131, %132, %cst_103 {dimension_numbers = #tpu.dot_dimension_numbers<[1], [0], [0], [1], [0, 0, 1, 1], [], []>} : vector<2x32xf32>, vector<32x48xf32>, vector<2x48xf32> -> vector<2x48xf32>
    %c680 = arith.constant 680 : index
    %c0_104 = arith.constant 0 : index
    %134 = vector.load %arg6[%c680, %c0_104] : memref<824x128xf32, #tpu.memory_space<vmem>>, vector<24x48xf32>
    %cst_105 = arith.constant dense<0.000000e+00> : vector<2x48xf32>
    %135 = tpu.matmul %96, %134, %cst_105 {dimension_numbers = #tpu.dot_dimension_numbers<[1], [0], [0], [1], [0, 0, 1, 1], [], []>} : vector<2x24xf32>, vector<24x48xf32>, vector<2x48xf32> -> vector<2x48xf32>
    %136 = arith.addf %133, %135 : vector<2x48xf32>
    %c704 = arith.constant 704 : index
    %c0_106 = arith.constant 0 : index
    %137 = vector.load %arg6[%c704, %c0_106] : memref<824x128xf32, #tpu.memory_space<vmem>>, vector<1x48xf32>
    %138 = vector.broadcast %137 : vector<1x48xf32> to vector<2x48xf32>
    %139 = arith.addf %136, %138 : vector<2x48xf32>
    %cst_107 = arith.constant 0.000000e+00 : f32
    %140 = vector.broadcast %cst_107 : f32 to vector<2x48xf32>
    %141 = arith.cmpf ogt, %139, %140 : vector<2x48xf32>
    %cst_108 = arith.constant 0.000000e+00 : f32
    %142 = vector.broadcast %cst_108 : f32 to vector<2x48xf32>
    %143 = arith.minimumf %139, %142 : vector<2x48xf32>
    %144 = math.exp %143 : vector<2x48xf32>
    %cst_109 = arith.constant 1.000000e+00 : f32
    %145 = vector.broadcast %cst_109 : f32 to vector<2x48xf32>
    %146 = arith.subf %144, %145 : vector<2x48xf32>
    %147 = arith.select %141, %139, %146 : vector<2x48xi1>, vector<2x48xf32>
    %c712 = arith.constant 712 : index
    %c0_110 = arith.constant 0 : index
    %148 = vector.load %arg6[%c712, %c0_110] : memref<824x128xf32, #tpu.memory_space<vmem>>, vector<48x3xf32>
    %cst_111 = arith.constant dense<0.000000e+00> : vector<2x3xf32>
    %149 = tpu.matmul %147, %148, %cst_111 {dimension_numbers = #tpu.dot_dimension_numbers<[1], [0], [0], [1], [0, 0, 1, 1], [], []>} : vector<2x48xf32>, vector<48x3xf32>, vector<2x3xf32> -> vector<2x3xf32>
    %c760 = arith.constant 760 : index
    %c0_112 = arith.constant 0 : index
    %150 = vector.load %arg6[%c760, %c0_112] : memref<824x128xf32, #tpu.memory_space<vmem>>, vector<1x3xf32>
    %151 = vector.broadcast %150 : vector<1x3xf32> to vector<2x3xf32>
    %152 = arith.addf %149, %151 : vector<2x3xf32>
    %cst_113 = arith.constant dense<0xFF800000> : vector<2xf32>
    %153 = vector.multi_reduction <maximumf>, %152, %cst_113 [1] : vector<2x3xf32> to vector<2xf32>
    %154 = vector.shape_cast %153 : vector<2xf32> to vector<2x1xf32>
    %155 = vector.broadcast %154 : vector<2x1xf32> to vector<2x3xf32>
    %156 = arith.subf %152, %155 : vector<2x3xf32>
    %157 = math.exp %156 : vector<2x3xf32>
    %cst_114 = arith.constant dense<0.000000e+00> : vector<2xf32>
    %158 = vector.multi_reduction <add>, %157, %cst_114 [1] : vector<2x3xf32> to vector<2xf32>
    %159 = vector.shape_cast %158 : vector<2xf32> to vector<2x1xf32>
    %160 = vector.broadcast %159 : vector<2x1xf32> to vector<2x3xf32>
    %161 = arith.divf %157, %160 : vector<2x3xf32>
    %c0_115 = arith.constant 0 : index
    %c0_116 = arith.constant 0 : index
    %162 = vector.load %arg7[%c0_115, %c0_116] : memref<2x3xf32, #tpu.memory_space<vmem>>, vector<2x3xf32>
    tpu.vector_store %arg7[%c0_115, %c0_116], %161 {strides = array<i32>} : memref<2x3xf32, #tpu.memory_space<vmem>>, vector<2x3xf32>,
    return
  }
}

</mosaic_0001>

<bundles_post_ra>
// kernel: fwd.1
= control target key start
LH: loop header
LB: loop body
LE: loop exit
PB: predicated region body
PF: predicated region fallthrough
CT: control target
= control target key end

     0   :  { %vm86_vm0 = vcmask 1046528   ;;  %vm67_vm1 = vcmask 384000   ;;  %s3635_s0 = inlined_call_operand.vmem [shape: f32[104,47], index: 0, kind: input, shape index: {}]   ;;  %s3636_s1 = inlined_call_operand.vmem [shape: f32[2,1], index: 1, kind: input, shape index: {}]   ;;  %s3637_s2 = inlined_call_operand.vmem [shape: f32[2,8], index: 2, kind: input, shape index: {}]   ;;  %s3638_s3 = inlined_call_operand.vmem [shape: f32[2,8], index: 3, kind: input, shape index: {}]   ;;  %s3639_s4 = inlined_call_operand.vmem [shape: f32[2,36], index: 4, kind: input, shape index: {}]   ;;  %s3640_s5 = inlined_call_operand.vmem [shape: f32[2,9], index: 5, kind: input, shape index: {}]   ;;  %s3641_s6 = inlined_call_operand.vmem [shape: f32[824,128], index: 6, kind: input, shape index: {}]   ;;  %s3642_s7 = inlined_call_operand.hbm [shape: f32[2,3], index: 7, kind: output, shape index: {}]  }
   0x1   :  { %v66_v0 = vld [vmem:[%s3641_s6 + $0x58] sm:$0x7f]  ;;  %v48_v1 = vld [vmem:[%s3641_s6 + $0x28] sm:$0x7f]  ;;  %v65_v2 = vld [vmem:[%s3641_s6 + $0x50] sm:$0xff] }
   0x2   :  { %2710 = vmatprep.subr.msk.mxu0 %vm86_vm0, %v66_v0  ;;  %2731 = vmatprep.subr.msk.mxu1 %vm86_vm0, %v48_v1  ;;  %v47_v3 = vld [vmem:[%s3641_s6 + $0x20] sm:$0xff]  ;;  %v64_v4 = vld [vmem:[%s3641_s6 + $0x48] sm:$0xff]  ;;  %v46_v5 = vld [vmem:[%s3641_s6 + $0x18] sm:$0xff] }
   0x3   :  { %2711 = vmatpush3.msk.msra.mxu0 %vm86_vm0, %v66_v0  ;;  %2732 = vmatpush3.msk.msra.mxu1 %vm86_vm0, %v48_v1  ;;  %v63_v6 = vld [vmem:[%s3641_s6 + $0x40] sm:$0xff]  ;;  %v45_v7 = vld [vmem:[%s3641_s6 + $0x10] sm:$0xff]  ;;  %v62_v8 = vld [vmem:[%s3641_s6 + $0x38] sm:$0xff] }
   0x4   :  { %2712 = vmatprep.subr.mxu0 %v65_v2  ;;  %2733 = vmatprep.subr.mxu1 %v47_v3  ;;  %v44_v9 = vld [vmem:[%s3641_s6 + $0x8] sm:$0xff]  ;;  %v61_v10 = vld [vmem:[%s3641_s6 + $0x30] sm:$0xff]  ;;  %v43_v11 = vld [vmem:[%s3641_s6] sm:$0xff] }
   0x5   :  { %2713 = vmatpush3.msra.mxu0 %v65_v2  ;;  %2734 = vmatpush3.msra.mxu1 %v47_v3  ;;  %v2462_v12 = vld [vmem:[%s3635_s0 + $0x1] ss:$2 sm:$0xff]  ;;  %v32_v13 = vld [vmem:[%s3635_s0] ss:$2 sm:$0xff]  ;;  %v2463_v14 = vld [vmem:[%s3635_s0 + $0x11] ss:$2 sm:$0xff] }
   0x6   :  { %2714 = vmatprep.subr.mxu0 %v64_v4  ;;  %2735 = vmatprep.subr.mxu1 %v46_v5  ;;  %v2457_v15 = vld [vmem:[%s3635_s0 + $0x10] ss:$2 sm:$0xff]  ;;  %v318_v16 = vld [vmem:[%s3641_s6 + $0x88] sm:$0x7f] }
   0x7   :  { %2715 = vmatpush3.msra.mxu0 %v64_v4  ;;  %2736 = vmatpush3.msra.mxu1 %v46_v5  ;;  %v2464_v17 = vld [vmem:[%s3635_s0 + $0x21] ss:$2 sm:$0xff] }
   0x8   :  { %2716 = vmatprep.subr.mxu0 %v63_v6  ;;  %2737 = vmatprep.subr.mxu1 %v45_v7 }
   0x9   :  { %2717 = vmatpush3.msra.mxu0 %v63_v6  ;;  %2738 = vmatpush3.msra.mxu1 %v45_v7 }
   0xa   :  { %2718 = vmatprep.subr.mxu0 %v62_v8  ;;  %2739 = vmatprep.subr.mxu1 %v44_v9 }
   0xb   :  { %2719 = vmatpush3.msra.mxu0 %v62_v8  ;;  %2740 = vmatpush3.msra.mxu1 %v44_v9 }
   0xc   :  { %2720 = vmatprep.subr.mxu0 %v61_v10  ;;  %2741 = vmatprep.subr.mxu1 %v43_v11 }
   0xd   :  { %2721 = vmatpush3.msra.mxu0 %v61_v10  ;;  %2722 = vmatprep.mubr.msk.f32.mxu0 %vm67_vm1, %v2462_v12 }
   0xe   :  { %12 = vsyncpa [#allocation6], 0  ;;  %2742 = vmatpush3.msra.mxu1 %v43_v11  ;;  %2743 = vmatprep.mubr.msk.f32.mxu1 %vm67_vm1, %v32_v13  ;;  %v2458_v18 = vld [vmem:[%s3635_s0 + $0x20] ss:$2 sm:$0xff]  ;;  %v2459_v20 = vld [vmem:[%s3635_s0 + $0x30] ss:$2 sm:$0xff] }
   0xf   :  { %2723 = vmatmul.mubr.msk.f32.vlgmr.msra.gmra.mxu0 %vm67_vm1, %v2463_v14  ;;  %2744 = vmatmul.mubr.msk.f32.vlgmr.msra.gmra.mxu1 %vm67_vm1, %v2457_v15  ;;  %v317_v19 = vld [vmem:[%s3641_s6 + $0x80] sm:$0xff]  ;;  %v2465_v21 = vld [vmem:[%s3635_s0 + $0x31] ss:$2 sm:$0xff]  ;;  %v2461_v26 = vld [vmem:[%s3635_s0 + $0x50] ss:$2 sm:$0xff]  ;;  %vm513_vm2 = vcmask 1042432  }
  0x10   :  { %2752 = vmatprep.subr.msk.mxu0 %vm86_vm0, %v318_v16  ;;  %2725 = vmatprep.mubr.msk.f32.mxu0 %vm67_vm1, %v2464_v17  ;;  %v316_v22 = vld [vmem:[%s3641_s6 + $0x78] sm:$0xff]  ;;  %v2466_v23 = vld [vmem:[%s3635_s0 + $0x41] ss:$2 sm:$0xff]  ;;  %v315_v24 = vld [vmem:[%s3641_s6 + $0x70] sm:$0xff]  ;;  %vm27_vm3 = vcmask 613376   ;;  %v3047_v48 = vmov 0.0  }
  0x11   :  { %2753 = vmatpush3.msk.msra.mxu0 %vm86_vm0, %v318_v16  ;;  %2746 = vmatprep.mubr.msk.f32.mxu1 %vm67_vm1, %v2458_v18  ;;  %v2460_v25 = vld [vmem:[%s3635_s0 + $0x40] ss:$2 sm:$0xff]  ;;  %v2467_v27 = vld [vmem:[%s3635_s0 + $0x51] ss:$2 sm:$0xff]  ;;  %29 = vst.msk [vmem:[#allocation2 + $0x18] sm:$0xff] %vm27_vm3, %v3047_v48  ;;  %28 = vst.msk [vmem:[#allocation2] sm:$0xff] %vm27_vm3, %v3047_v48 }
  0x12   :  { %2754 = vmatprep.subr.mxu0 %v317_v19  ;;  %v314_v28 = vld [vmem:[%s3641_s6 + $0x68] sm:$0xff]  ;;  %v313_v30 = vld [vmem:[%s3641_s6 + $0x60] sm:$0xff]  ;;  %v482_v37 = vld [vmem:[%s3641_s6 + $0xd8] sm:$0x7]  ;;  %30 = vst.msk [vmem:[#allocation2 + $0x30] sm:$0xff] %vm27_vm3, %v3047_v48  ;;  %vm460_vm4 = vcmask 612352  }
  0x13   :  { %2755 = vmatpush3.msra.mxu0 %v317_v19  ;;  %2747 = vmatmul.mubr.msk.f32.gmra.mxu1 %vm67_vm1, %v2459_v20  ;;  %v2482_v29 = vld [vmem:[%s3635_s0 + $0x2] ss:$2 sm:$0xff]  ;;  %v2483_v31 = vld [vmem:[%s3635_s0 + $0x12] ss:$2 sm:$0xff]  ;;  %31 = vst.msk [vmem:[#allocation2 + $0x48] sm:$0xff] %vm27_vm3, %v3047_v48  ;;  %vm959_vm5 = vcmask 195584  }
  0x14   :  { %2726 = vmatmul.mubr.msk.f32.gmra.mxu0 %vm67_vm1, %v2465_v21  ;;  %2756 = vmatprep.subr.mxu0 %v316_v22  ;;  %v2484_v32 = vld [vmem:[%s3635_s0 + $0x22] ss:$2 sm:$0xff]  ;;  %v2485_v33 = vld [vmem:[%s3635_s0 + $0x32] ss:$2 sm:$0xff]  ;;  %vm3048_vm6 = vmmov 0   ;;  %vm1185_vm7 = vcmask 56320  }
  0x15   :  { %2757 = vmatpush3.msra.mxu0 %v316_v22  ;;  %2728 = vmatprep.mubr.msk.f32.mxu0 %vm67_vm1, %v2466_v23  ;;  %v2486_v34 = vld [vmem:[%s3635_s0 + $0x42] ss:$2 sm:$0xff]  ;;  %v2487_v35 = vld [vmem:[%s3635_s0 + $0x52] ss:$2 sm:$0xff]  ;;  %vm1772_vm8 = vcmask 1040384   ;;  %vm1850_vm9 = vcmask 1043456  }
  0x16   :  { %2758 = vmatprep.subr.mxu0 %v315_v24  ;;  %2749 = vmatprep.mubr.msk.f32.mxu1 %vm67_vm1, %v2460_v25  ;;  %v500_v36 = vld [vmem:[%s3641_s6 + $0x128] sm:$0x7]  ;;  %v499_v38 = vld [vmem:[%s3641_s6 + $0x120] sm:$0xff]  ;;  %v481_v39 = vld [vmem:[%s3641_s6 + $0xd0] sm:$0xff]  ;;  %vm1768_vm10 = vcmask 72704   ;;  %vm1846_vm11 = vcmask 293888  }
  0x17   :  { %2759 = vmatpush3.msra.mxu0 %v315_v24  ;;  %2750 = vmatmul.mubr.msk.f32.gmra.mxu1 %vm67_vm1, %v2461_v26  ;;  %v498_v40 = vld [vmem:[%s3641_s6 + $0x118] sm:$0xff]  ;;  %v480_v41 = vld [vmem:[%s3641_s6 + $0xc8] sm:$0xff]  ;;  %v497_v42 = vld [vmem:[%s3641_s6 + $0x110] sm:$0xff]  ;;  %vm2016_vm12 = vcmask 64512   ;;  %vm1939_vm13 = vcmask 130048   ;;  %vm2259_vm15 = vcmask 261120  }
  0x18   :  { %2729 = vmatmul.mubr.msk.f32.gmra.mxu0 %vm67_vm1, %v2467_v27  ;;  %2760 = vmatprep.subr.mxu0 %v314_v28  ;;  %v479_v43 = vld [vmem:[%s3641_s6 + $0xc0] sm:$0xff]  ;;  %v496_v44 = vld [vmem:[%s3641_s6 + $0x108] sm:$0xff]  ;;  %v478_v45 = vld [vmem:[%s3641_s6 + $0xb8] sm:$0xff]  ;;  %s3050_s29 = smov [#allocation5]  }
  0x19   :  { %2761 = vmatpush3.msra.mxu0 %v314_v28  ;;  %2764 = vmatprep.mubr.msk.f32.mxu0 %vm67_vm1, %v2482_v29  ;;  %v495_v46 = vld [vmem:[%s3641_s6 + $0x100] sm:$0xff]  ;;  %v477_v47 = vld [vmem:[%s3641_s6 + $0xb0] sm:$0xff]  ;;  %v494_v49 = vld [vmem:[%s3641_s6 + $0xf8] sm:$0xff] }
  0x1a   :  { %2762 = vmatprep.subr.mxu0 %v313_v30  ;;  %2773 = vmatprep.subr.msk.mxu1 %vm513_vm2, %v500_v36  ;;  %v476_v50 = vld [vmem:[%s3641_s6 + $0xa8] sm:$0xff]  ;;  %v493_v51 = vld [vmem:[%s3641_s6 + $0xf0] sm:$0xff]  ;;  %v475_v52 = vld [vmem:[%s3641_s6 + $0xa0] sm:$0xff] }
  0x1b   :  { %2763 = vmatpush3.msra.mxu0 %v313_v30  ;;  %2774 = vmatpush3.msk.msra.mxu1 %vm513_vm2, %v500_v36  ;;  %v492_v53 = vld [vmem:[%s3641_s6 + $0xe8] sm:$0xff]  ;;  %v474_v54 = vld [vmem:[%s3641_s6 + $0x98] sm:$0xff]  ;;  %v491_v55 = vld [vmem:[%s3641_s6 + $0xe0] sm:$0xff] }
  0x1c   :  { %2765 = vmatmul.mubr.msk.f32.vlgmr.msra.gmra.mxu0 %vm67_vm1, %v2483_v31  ;;  %2799 = vmatprep.subr.msk.mxu0 %vm513_vm2, %v482_v37  ;;  %v473_v56 = vld [vmem:[%s3641_s6 + $0x90] sm:$0xff]  ;;  %v3298_v57 = vld [vmem:[%s3641_s6 + $0x178] sm:$0x7]  ;;  %v3303_v58 = vld [vmem:[%s3641_s6 + $0x1c8] sm:$0x7] }
  0x1d   :  { %2767 = vmatprep.mubr.msk.f32.mxu0 %vm67_vm1, %v2484_v32  ;;  %2800 = vmatpush3.msk.msra.mxu0 %vm513_vm2, %v482_v37  ;;  %v2495_v7 = vld [vmem:[%s3641_s6 + $0x200] ss:$0 sm:$0xff] }
  0x1e   :  { %2775 = vmatprep.subr.mxu1 %v499_v38  ;;  %2801 = vmatprep.subr.mxu0 %v481_v39 }
  0x1f   :  { %2776 = vmatpush3.msra.mxu1 %v499_v38  ;;  %2802 = vmatpush3.msra.mxu0 %v481_v39  ;;  %v486_v38 = vld [vmem:[#allocation2 + $0x20] ss:$3 sm:$0xff]  ;;  %v468_v39 = vld [vmem:[#allocation2 + $0x1f] ss:$3 sm:$0xff] }
  0x20   :  { %2768 = vmatmul.mubr.msk.f32.gmra.mxu0 %vm67_vm1, %v2485_v33  ;;  %2777 = vmatprep.subr.mxu1 %v498_v40 }
  0x21   :  { %2770 = vmatprep.mubr.msk.f32.mxu0 %vm67_vm1, %v2486_v34  ;;  %2803 = vmatprep.subr.mxu0 %v480_v41 }
  0x22   :  { %2778 = vmatpush3.msra.mxu1 %v498_v40  ;;  %2804 = vmatpush3.msra.mxu0 %v480_v41 }
  0x23   :  { %2779 = vmatprep.subr.mxu1 %v497_v42  ;;  %2805 = vmatprep.subr.mxu0 %v479_v43 }
  0x24   :  { %2771 = vmatmul.mubr.msk.f32.gmra.mxu0 %vm67_vm1, %v2487_v35  ;;  %2780 = vmatpush3.msra.mxu1 %v497_v42  ;;  %v718_v42 = vld [vmem:[%s3641_s6 + $0x170] sm:$0xff]  ;;  %vm2356_vm1 = vcmask 392192  }
  0x25   :  { %2806 = vmatpush3.msra.mxu0 %v479_v43  ;;  %2781 = vmatprep.subr.mxu1 %v496_v44  ;;  %v840_v43 = vld [vmem:[%s3641_s6 + $0x1c0] sm:$0xff] }
  0x26   :  { %2807 = vmatprep.subr.mxu0 %v478_v45  ;;  %2782 = vmatpush3.msra.mxu1 %v496_v44  ;;  %v717_v44 = vld [vmem:[%s3641_s6 + $0x168] sm:$0xff] }
  0x27   :  { %2808 = vmatpush3.msra.mxu0 %v478_v45  ;;  %2783 = vmatprep.subr.mxu1 %v495_v46 }
  0x28   :  { %2809 = vmatprep.subr.mxu0 %v477_v47  ;;  %2784 = vmatpush3.msra.mxu1 %v495_v46 }
  0x29   :  { %2810 = vmatpush3.msra.mxu0 %v477_v47  ;;  %2785 = vmatprep.subr.mxu1 %v494_v49  ;;  %v839_v47 = vld [vmem:[%s3641_s6 + $0x1b8] sm:$0xff] }
  0x2a   :  { %2811 = vmatprep.subr.mxu0 %v476_v50  ;;  %2786 = vmatpush3.msra.mxu1 %v494_v49  ;;  %v490_v49 = vld [vmem:[#allocation2 + $0x50] ss:$3 sm:$0xff] }
  0x2b   :  { %2812 = vmatpush3.msra.mxu0 %v476_v50  ;;  %2787 = vmatprep.subr.mxu1 %v493_v51  ;;  %v472_v50 = vld [vmem:[#allocation2 + $0x4f] ss:$3 sm:$0xff] }
  0x2c   :  { %2813 = vmatprep.subr.mxu0 %v475_v52  ;;  %2788 = vmatpush3.msra.mxu1 %v493_v51  ;;  %v716_v51 = vld [vmem:[%s3641_s6 + $0x160] sm:$0xff] }
  0x2d   :  { %2814 = vmatpush3.msra.mxu0 %v475_v52  ;;  %2789 = vmatprep.subr.mxu1 %v492_v53  ;;  %v838_v52 = vld [vmem:[%s3641_s6 + $0x1b0] sm:$0xff] }
  0x2e   :  { %2815 = vmatprep.subr.mxu0 %v474_v54  ;;  %2790 = vmatpush3.msra.mxu1 %v492_v53 }
  0x2f   :  { %2816 = vmatpush3.msra.mxu0 %v474_v54  ;;  %2791 = vmatprep.subr.mxu1 %v491_v55 }
  0x30   :  { %2817 = vmatprep.subr.mxu0 %v473_v56  ;;  %2792 = vmatpush3.msra.mxu1 %v491_v55  ;;  %v715_v55 = vld [vmem:[%s3641_s6 + $0x158] sm:$0xff] }
  0x31   :  { %2818 = vmatpush3.msra.mxu0 %v473_v56  ;;  %2825 = vmatprep.subr.msk.mxu1 %vm513_vm2, %v3298_v57  ;;  %v837_v56 = vld [vmem:[%s3641_s6 + $0x1a8] sm:$0xff] }
  0x32   :  { %2851 = vmatprep.subr.msk.mxu0 %vm513_vm2, %v3303_v58 }
  0xcf   :  { %v2724_v59 = vpop.f32.mrf.mxu0  ;;  %v2745_v60 = vpop.f32.mrf.mxu1 }
  0xd0   :  { %v278_v5 = vadd.f32 %v2745_v60, %v2724_v59  ;;  %v713_v59 = vld [vmem:[%s3641_s6 + $0x148] sm:$0xff]  ;;  %v835_v60 = vld [vmem:[%s3641_s6 + $0x198] sm:$0xff] }
  0xd1   :  { %v156_v61 = vpop.f32.mrf.mxu0  ;;  %v272_v62 = vpop.f32.mrf.mxu1 }
  0xd2   :  { %v273_v8 = vadd.f32 %v272_v62, %v156_v61  ;;  %v712_v61 = vld [vmem:[%s3641_s6 + $0x140] sm:$0xff]  ;;  %v834_v62 = vld [vmem:[%s3641_s6 + $0x190] sm:$0xff] }
  0xd3   :  { %v2748_v0 = vpop.f32.mrf.mxu1 }
  0xd4   :  { %v2727_v63 = vpop.f32.mrf.mxu0 }
  0xd5   :  { %v282_v3 = vpop.f32.mrf.mxu1  ;;  %v288_v12 = vadd.f32 %v2748_v0, %v2727_v63  ;;  %v711_v63 = vld [vmem:[%s3641_s6 + $0x138] sm:$0xff]  ;;  %v833_v0 = vld [vmem:[%s3641_s6 + $0x188] sm:$0xff] }
  0xd6   :  { %v166_v1 = vpop.f32.mrf.mxu0 }
  0xd7   :  { %v2751_v10 = vpop.f32.mrf.mxu1  ;;  %v283_v16 = vadd.f32 %v282_v3, %v166_v1  ;;  %v710_v1 = vld [vmem:[%s3641_s6 + $0x130] sm:$0xff] }
  0xd8   :  { %v2730_v2 = vpop.f32.mrf.mxu0  ;;  %v705_v3 = vld [vmem:[#allocation2 + $0x21] ss:$3 sm:$0xff] }
  0xd9   :  { %v292_v20 = vpop.f32.mrf.mxu1  ;;  %v298_v22 = vadd.f32 %v2751_v10, %v2730_v2  ;;  %v832_v2 = vld [vmem:[%s3641_s6 + $0x180] sm:$0xff]  ;;  %v976_v10 = vld [vmem:[%s3641_s6 + $0x1f0] sm:$0xff] }
  0xda   :  { %v176_v4 = vpop.f32.mrf.mxu0 }
  0xdb   :  { %v293_v27 = vadd.f32 %v292_v20, %v176_v4  ;;  %v827_v4 = vld [vmem:[#allocation2 + $0x22] ss:$3 sm:$0xff] }
  0xdc   :  { %v2766_v6 = vpop.f32.mrf.mxu0 }
  0xdd   :  { %v436_v9 = vadd.f32 %v2766_v6, %v278_v5 }
  0xde   :  { %v406_v11 = vpop.f32.mrf.mxu0 }
  0xdf   :  { %v447_v13 = vadd.f32 %v2495_v7, %v436_v9  ;;  %v435_v14 = vadd.f32 %v406_v11, %v273_v8  ;;  %v831_v8 = vld [vmem:[#allocation2 + $0x52] ss:$3 sm:$0xff]  ;;  %v975_v11 = vld [vmem:[%s3641_s6 + $0x1e8] sm:$0xff] }
  0xe0   :  { %v2769_v15 = vpop.f32.mrf.mxu0  ;;  %v977_v9 = vld [vmem:[%s3641_s6 + $0x1f8] sm:$0xff] }
  0xe1   :  { %v453_v17 = vmax.f32 %v447_v13, 0.0  ;;  %v446_v18 = vadd.f32 %v2495_v7, %v435_v14  ;;  %v438_v19 = vadd.f32 %v2769_v15, %v288_v12  ;;  %v970_v12 = vld [vmem:[%s3641_s6 + $0x1e0] sm:$0xff] }
  0xe2   :  { %v416_v21 = vpop.f32.mrf.mxu0 }
  0xe3   :  { %459 = vst.msk [vmem:[#allocation2 + $0x10] sm:$0xff] %vm27_vm3, %v453_v17  ;;  %v452_v23 = vmax.f32 %v446_v18, 0.0  ;;  %v449_v24 = vadd.f32 %v2495_v7, %v438_v19  ;;  %v437_v25 = vadd.f32 %v416_v21, %v283_v16 }
  0xe4   :  { %v2772_v26 = vpop.f32.mrf.mxu0 }
  0xe5   :  { %458 = vst.msk [vmem:[#allocation2 + $0x8] sm:$0xff] %vm27_vm3, %v452_v23  ;;  %v455_v28 = vmax.f32 %v449_v24, 0.0  ;;  %v448_v29 = vadd.f32 %v2495_v7, %v437_v25  ;;  %v440_v30 = vadd.f32 %v2772_v26, %v298_v22  ;;  %v2516_v26 = vld [vmem:[%s3641_s6 + $0x208] ss:$0 sm:$0xff] }
  0xe6   :  { %v426_v31 = vpop.f32.mrf.mxu0 }
  0xe7   :  { %462 = vst.msk [vmem:[#allocation2 + $0x38] sm:$0xff] %vm27_vm3, %v455_v28  ;;  %v454_v32 = vmax.f32 %v448_v29, 0.0  ;;  %v451_v33 = vadd.f32 %v2495_v7, %v440_v30  ;;  %v439_v34 = vadd.f32 %v426_v31, %v293_v27 }
  0xe9   :  { %461 = vst.msk [vmem:[#allocation2 + $0x18] sm:$0x7f] %vm460_vm4, %v454_v32  ;;  %v457_v35 = vmax.f32 %v451_v33, 0.0  ;;  %v450_v36 = vadd.f32 %v2495_v7, %v439_v34  ;;  %v709_v7 = vld [vmem:[#allocation2 + $0x51] ss:$3 sm:$0xff] }
  0xeb   :  { %464 = vst.msk [vmem:[#allocation2 + $0x48] sm:$0x7f] %vm460_vm4, %v457_v35  ;;  %v456_v37 = vmax.f32 %v450_v36, 0.0 }
  0xed   :  { %463 = vst.msk [vmem:[#allocation2 + $0x40] sm:$0xff] %vm27_vm3, %v456_v37 }
  0xf0   :  { %v484_v40 = vld [vmem:[#allocation2 + $0x8] ss:$3 sm:$0xff]  ;;  %v466_v41 = vld [vmem:[#allocation2 + $0x7] ss:$3 sm:$0xff]  ;;  %v703_v53 = vld [vmem:[#allocation2 + $0x9] ss:$3 sm:$0xff] }
  0xf1   :  { %2793 = vmatprep.mubr.msk.f32.mxu1 %vm27_vm3, %v484_v40  ;;  %2819 = vmatprep.mubr.msk.f32.mxu0 %vm27_vm3, %v466_v41  ;;  %v825_v54 = vld [vmem:[#allocation2 + $0xa] ss:$3 sm:$0xff] }
  0xf2   :  { %2794 = vmatmul.mubr.msk.f32.vlgmr.msra.gmra.mxu1 %vm27_vm3, %v486_v38  ;;  %2820 = vmatmul.mubr.msk.f32.vlgmr.msra.gmra.mxu0 %vm27_vm3, %v468_v39 }
  0xf3   :  { %2826 = vmatpush3.msk.msra.mxu1 %vm513_vm2, %v3298_v57  ;;  %2852 = vmatpush3.msk.msra.mxu0 %vm513_vm2, %v3303_v58  ;;  %v714_v57 = vld [vmem:[%s3641_s6 + $0x150] sm:$0xff]  ;;  %v836_v58 = vld [vmem:[%s3641_s6 + $0x1a0] sm:$0xff] }
  0xf4   :  { %2827 = vmatprep.subr.mxu1 %v718_v42  ;;  %2853 = vmatprep.subr.mxu0 %v840_v43  ;;  %v488_v45 = vld [vmem:[#allocation2 + $0x38] ss:$3 sm:$0xff]  ;;  %v470_v46 = vld [vmem:[#allocation2 + $0x37] ss:$3 sm:$0xff]  ;;  %v707_v5 = vld [vmem:[#allocation2 + $0x39] ss:$3 sm:$0xff] }
  0xf5   :  { %2828 = vmatpush3.msra.mxu1 %v718_v42  ;;  %2854 = vmatpush3.msra.mxu0 %v840_v43  ;;  %v829_v6 = vld [vmem:[#allocation2 + $0x3a] ss:$3 sm:$0xff] }
  0xf6   :  { %2796 = vmatprep.mubr.msk.f32.mxu1 %vm27_vm3, %v488_v45  ;;  %2822 = vmatprep.mubr.msk.f32.mxu0 %vm27_vm3, %v470_v46 }
  0xf7   :  { %2829 = vmatprep.subr.mxu1 %v717_v44  ;;  %2855 = vmatprep.subr.mxu0 %v839_v47 }
  0xf8   :  { %2797 = vmatmul.mubr.msk.f32.gmra.mxu1 %vm27_vm3, %v490_v49  ;;  %2823 = vmatmul.mubr.msk.f32.gmra.mxu0 %vm27_vm3, %v472_v50 }
  0xf9   :  { %2830 = vmatpush3.msra.mxu1 %v717_v44  ;;  %2856 = vmatpush3.msra.mxu0 %v839_v47 }
  0xfa   :  { %2831 = vmatprep.subr.mxu1 %v716_v51  ;;  %2845 = vmatprep.mubr.msk.f32.mxu1 %vm27_vm3, %v703_v53 }
  0xfb   :  { %2857 = vmatprep.subr.mxu0 %v838_v52  ;;  %2871 = vmatprep.mubr.msk.f32.mxu0 %vm27_vm3, %v825_v54  ;;  %v969_v54 = vld [vmem:[%s3641_s6 + $0x1d8] sm:$0xff] }
  0xfc   :  { %2832 = vmatpush3.msra.mxu1 %v716_v51  ;;  %2858 = vmatpush3.msra.mxu0 %v838_v52 }
  0xfd   :  { %2833 = vmatprep.subr.mxu1 %v715_v55  ;;  %2859 = vmatprep.subr.mxu0 %v837_v56 }
  0xfe   :  { %2834 = vmatpush3.msra.mxu1 %v715_v55  ;;  %2860 = vmatpush3.msra.mxu0 %v837_v56  ;;  %v968_v55 = vld [vmem:[%s3641_s6 + $0x1d0] sm:$0xff] }
  0xff   :  { %2835 = vmatprep.subr.mxu1 %v714_v57  ;;  %2861 = vmatprep.subr.mxu0 %v836_v58 }
 0x100   :  { %2836 = vmatpush3.msra.mxu1 %v714_v57  ;;  %2862 = vmatpush3.msra.mxu0 %v836_v58 }
 0x101   :  { %2837 = vmatprep.subr.mxu1 %v713_v59  ;;  %2863 = vmatprep.subr.mxu0 %v835_v60 }
 0x102   :  { %2838 = vmatpush3.msra.mxu1 %v713_v59  ;;  %2864 = vmatpush3.msra.mxu0 %v835_v60 }
 0x103   :  { %2839 = vmatprep.subr.mxu1 %v712_v61  ;;  %2865 = vmatprep.subr.mxu0 %v834_v62 }
 0x104   :  { %2840 = vmatpush3.msra.mxu1 %v712_v61  ;;  %2866 = vmatpush3.msra.mxu0 %v834_v62  ;;  %v1194_v61 = vld [vmem:[%s3641_s6 + $0x220] sm:$0x7f]  ;;  %v1191_v62 = vld [vmem:[%s3641_s6 + $0x218] sm:$0x7f] }
 0x105   :  { %2841 = vmatprep.subr.mxu1 %v711_v63  ;;  %2867 = vmatprep.subr.mxu0 %v833_v0 }
 0x106   :  { %2842 = vmatpush3.msra.mxu1 %v711_v63  ;;  %2868 = vmatpush3.msra.mxu0 %v833_v0 }
 0x107   :  { %2843 = vmatprep.subr.mxu1 %v710_v1  ;;  %2869 = vmatprep.subr.mxu0 %v832_v2 }
 0x108   :  { %2844 = vmatpush3.msra.mxu1 %v710_v1  ;;  %2870 = vmatpush3.msra.mxu0 %v832_v2 }
 0x109   :  { %2846 = vmatmul.mubr.msk.f32.vlgmr.msra.gmra.mxu1 %vm27_vm3, %v705_v3  ;;  %2872 = vmatmul.mubr.msk.f32.vlgmr.msra.gmra.mxu0 %vm27_vm3, %v827_v4  ;;  %v2525_v4 = vld [vmem:[%s3641_s6 + $0x210] ss:$0 sm:$0xff] }
 0x10a   :  { %2848 = vmatprep.mubr.msk.f32.mxu1 %vm27_vm3, %v707_v5  ;;  %2874 = vmatprep.mubr.msk.f32.mxu0 %vm27_vm3, %v829_v6 }
 0x10b   :  { %2906 = vmatprep.subr.mxu0 %v3047_v48  ;;  %2877 = vmatprep.subr.mxu1 %v977_v9 }
 0x10c   :  { %2878 = vmatpush3.msra.mxu1 %v977_v9  ;;  %2907 = vmatpush3.msk.msra.mxu0 %vm86_vm0, %v1191_v62 }
 0x10d   :  { %2849 = vmatmul.mubr.msk.f32.gmra.mxu1 %vm27_vm3, %v709_v7  ;;  %2875 = vmatmul.mubr.msk.f32.gmra.mxu0 %vm27_vm3, %v831_v8  ;;  %vm2430_vm3 = vcmask 17408  }
 0x10e   :  { %2879 = vmatprep.subr.mxu1 %v976_v10  ;;  %2908 = vmatprep.mubr.msk.f32.mxu0 %vm3048_vm6, %v3047_v48 }
 0x10f   :  { %2880 = vmatpush3.msra.mxu1 %v976_v10  ;;  %2916 = vmatprep.subr.mxu0 %v3047_v48 }
 0x110   :  { %2881 = vmatprep.subr.mxu1 %v975_v11 }
 0x111   :  { %2882 = vmatpush3.msra.mxu1 %v975_v11 }
 0x112   :  { %2889 = vmatprep.subr.mxu1 %v970_v12 }
 0x1b2   :  { %v2795_v13 = vpop.f32.mrf.mxu1  ;;  %v2821_v14 = vpop.f32.mrf.mxu0 }
 0x1b3   :  { %v689_v21 = vadd.f32 %v2821_v14, %v2795_v13  ;;  %v1349_v14 = vld [vmem:[%s3641_s6 + $0x228] sm:$0x7f] }
 0x1b4   :  { %v583_v15 = vpop.f32.mrf.mxu1  ;;  %v683_v16 = vpop.f32.mrf.mxu0 }
 0x1b5   :  { %v684_v24 = vadd.f32 %v683_v16, %v583_v15  ;;  %v1429_v15 = vld [vmem:[%s3641_s6 + $0x230] sm:$0x7f] }
 0x1b8   :  { %v2798_v17 = vpop.f32.mrf.mxu1  ;;  %v2824_v18 = vpop.f32.mrf.mxu0 }
 0x1b9   :  { %v699_v29 = vadd.f32 %v2824_v18, %v2798_v17  ;;  %v1509_v18 = vld [vmem:[%s3641_s6 + $0x238] sm:$0x7f] }
 0x1ba   :  { %v593_v19 = vpop.f32.mrf.mxu1  ;;  %v693_v20 = vpop.f32.mrf.mxu0 }
 0x1bb   :  { %v694_v34 = vadd.f32 %v693_v20, %v593_v19  ;;  %v1589_v19 = vld [vmem:[%s3641_s6 + $0x240] sm:$0x7f] }
 0x1c9   :  { %v2847_v22 = vpop.f32.mrf.mxu1  ;;  %v2873_v23 = vpop.f32.mrf.mxu0 }
 0x1ca   :  { %v821_v25 = vadd.f32 %v2847_v22, %v689_v21  ;;  %v1669_v22 = vld [vmem:[%s3641_s6 + $0x248] sm:$0x7f] }
 0x1cb   :  { %v801_v27 = vpop.f32.mrf.mxu1  ;;  %v923_v28 = vpop.f32.mrf.mxu0 }
 0x1cc   :  { %v943_v30 = vadd.f32 %v2873_v23, %v821_v25  ;;  %v820_v31 = vadd.f32 %v801_v27, %v684_v24  ;;  %v1767_v23 = vld [vmem:[%s3641_s6 + $0x330] sm:$0x1]  ;;  %v1764_v27 = vld [vmem:[%s3641_s6 + $0x320] sm:$0xf] }
 0x1cd   :  { %v2850_v32 = vpop.f32.mrf.mxu1  ;;  %v2876_v33 = vpop.f32.mrf.mxu0 }
 0x1ce   :  { %v952_v35 = vadd.f32 %v2516_v26, %v943_v30  ;;  %v942_v36 = vadd.f32 %v923_v28, %v820_v31  ;;  %v823_v37 = vadd.f32 %v2850_v32, %v699_v29  ;;  %v1765_v28 = vld [vmem:[%s3640_s5] sm:$0x3]  ;;  %v1763_v30 = vld [vmem:[%s3641_s6 + $0x318] sm:$0xff]  ;;  %v1762_v31 = vld [vmem:[%s3641_s6 + $0x310] sm:$0xff]  ;;  %s2449_s5 = sshll.u32 %s3050_s29, 4  ;;  %s2450_s5 = int_to_ptr.vmem [resolvable:$true] %s2449_s5 }
 0x1cf   :  { %v811_v38 = vpop.f32.mrf.mxu1  ;;  %v933_v43 = vpop.f32.mrf.mxu0  ;;  %v1761_v32 = vld [vmem:[%s3641_s6 + $0x308] sm:$0xff]  ;;  %p3030_p1 = scmp.lt.s32.totalorder %s2450_s5, %s2450_s5 }
 0x1d0   :  { %v956_v39 = vmax.f32 %v952_v35, 0.0  ;;  %v951_v40 = vadd.f32 %v2516_v26, %v942_v36  ;;  %v945_v41 = vadd.f32 %v2876_v33, %v823_v37  ;;  %v822_v42 = vadd.f32 %v811_v38, %v694_v34  ;;  %v1760_v33 = vld [vmem:[%s3641_s6 + $0x300] sm:$0xff]  ;;  %v1938_v35 = vld [vmem:[%s3641_s6 + $0x268] sm:$0xff]  ;;  %v2092_v37 = vld [vmem:[%s3641_s6 + $0x278] sm:$0xff] }
 0x1d1   :  { %v1759_v34 = vld [vmem:[%s3639_s4] sm:$0x3] }
 0x1d2   :  { %961 = vst.msk [vmem:[#allocation3 + $0x8] sm:$0xff] %vm959_vm5, %v956_v39  ;;  %v955_v44 = vmax.f32 %v951_v40, 0.0  ;;  %v954_v45 = vadd.f32 %v2516_v26, %v945_v41  ;;  %v944_v46 = vadd.f32 %v933_v43, %v822_v42  ;;  %v1937_v36 = vld [vmem:[%s3641_s6 + $0x260] sm:$0xff]  ;;  %v3049_v40 = vmov 0  }
 0x1d3   :  { %v2091_v38 = vld [vmem:[%s3638_s3] sm:$0x3]  ;;  %3012 = vset.pattern.permute.xlu0 %v3049_v40 }
 0x1d4   :  { %960 = vst.msk [vmem:[#allocation3] sm:$0xff] %vm959_vm5, %v955_v44  ;;  %v958_v47 = vmax.f32 %v954_v45, 0.0  ;;  %v953_v49 = vadd.f32 %v2516_v26, %v944_v46  ;;  %v1766_v26 = vld [vmem:[%s3641_s6 + $0x328] sm:$0xff]  ;;  %v1925_v39 = vld [vmem:[%s3636_s1] sm:$0x3] }
 0x1d5   :  { %1929 = vperm.xlu0 %3012, %v1925_v39  }
 0x1d6   :  { %963 = vst.msk [vmem:[#allocation3 + $0x18] sm:$0xff] %vm959_vm5, %v958_v47  ;;  %v957_v50 = vmax.f32 %v953_v49, 0.0 }
 0x1d8   :  { %962 = vst.msk [vmem:[#allocation3 + $0x10] sm:$0xff] %vm959_vm5, %v957_v50 }
 0x1d9   :  { %v965_v58 = vld [vmem:[#allocation3 + $0x8] sm:$0xff] }
 0x1db   :  { %v971_v51 = vld [vmem:[#allocation3 + $0x1] sm:$0xff] }
 0x1dc   :  { %2883 = vmatprep.mubr.msk.f32.mxu1 %vm959_vm5, %v971_v51  ;;  %v964_v57 = vld [vmem:[#allocation3] sm:$0xff] }
 0x1dd   :  { %v974_v56 = vld [vmem:[#allocation3 + $0x19] sm:$0xff] }
 0x1de   :  { %v967_v60 = vld [vmem:[#allocation3 + $0x18] sm:$0xff] }
 0x1df   :  { %v972_v52 = vld [vmem:[#allocation3 + $0x9] sm:$0xff]  ;;  %v973_v53 = vld [vmem:[#allocation3 + $0x11] sm:$0xff] }
 0x1e0   :  { %2884 = vmatmul.mubr.msk.f32.vlgmr.msra.gmra.mxu1 %vm959_vm5, %v972_v52  ;;  %v966_v59 = vld [vmem:[#allocation3 + $0x10] sm:$0xff] }
 0x1e1   :  { %2886 = vmatprep.mubr.msk.f32.mxu1 %vm959_vm5, %v973_v53  ;;  %2890 = vmatpush3.msra.mxu1 %v970_v12 }
 0x1e2   :  { %2891 = vmatprep.subr.mxu1 %v969_v54 }
 0x1e3   :  { %2892 = vmatpush3.msra.mxu1 %v969_v54 }
 0x1e4   :  { %2887 = vmatmul.mubr.msk.f32.gmra.mxu1 %vm959_vm5, %v974_v56  ;;  %2893 = vmatprep.subr.mxu1 %v968_v55 }
 0x1e5   :  { %2895 = vmatprep.mubr.msk.f32.mxu1 %vm959_vm5, %v964_v57  ;;  %2894 = vmatpush3.msra.mxu1 %v968_v55 }
 0x1e6   :  { %2901 = vmatprep.subr.mxu1 %v3047_v48 }
 0x1e8   :  { %2896 = vmatmul.mubr.msk.f32.vlgmr.msra.gmra.mxu1 %vm959_vm5, %v965_v58 }
 0x1e9   :  { %2898 = vmatprep.mubr.msk.f32.mxu1 %vm959_vm5, %v966_v59  ;;  %2902 = vmatpush3.msk.msra.mxu1 %vm86_vm0, %v1194_v61  ;;  %v2540_v61 = vld [vmem:[%s3641_s6 + $0x250] ss:$0 sm:$0xff] }
 0x1ea   :  { %2911 = vmatprep.subr.mxu1 %v3047_v48 }
 0x1ec   :  { %2899 = vmatmul.mubr.msk.f32.gmra.mxu1 %vm959_vm5, %v967_v60 }
 0x1ed   :  { %2903 = vmatprep.mubr.msk.f32.mxu1 %vm3048_vm6, %v3047_v48 }
 0x2a0   :  { %v2885_v63 = vpop.f32.mrf.mxu1 }
 0x2a2   :  { %v1056_v0 = vpop.f32.mrf.mxu1 }
 0x2a4   :  { %v2888_v1 = vpop.f32.mrf.mxu1 }
 0x2a6   :  { %v1066_v2 = vpop.f32.mrf.mxu1 }
 0x2a8   :  { %v2897_v3 = vpop.f32.mrf.mxu1 }
 0x2aa   :  { %v1153_v5 = vpop.f32.mrf.mxu1 }
 0x2ab   :  { %v1154_v6 = vadd.f32 %v1153_v5, %v1056_v0 }
 0x2ac   :  { %v2900_v7 = vpop.f32.mrf.mxu1 }
 0x2ad   :  { %v1177_v8 = vadd.f32 %v2525_v4, %v1154_v6  ;;  %v2015_v7 = vld [vmem:[%s3641_s6 + $0x270] sm:$0xff] }
 0x2ae   :  { %v1163_v9 = vpop.f32.mrf.mxu1 }
 0x2af   :  { %v1181_v10 = vmax.f32 %v1177_v8, 0.0  ;;  %v1164_v11 = vadd.f32 %v1163_v9, %v1066_v2  ;;  %v2014_v9 = vld [vmem:[%s3637_s2] sm:$0x3] }
 0x2b1   :  { %1186 = vst.msk [vmem:[#allocation4] sm:$0xff] %vm1185_vm7, %v1181_v10  ;;  %v1179_v12 = vadd.f32 %v2525_v4, %v1164_v11  ;;  %v2185_v11 = vld [vmem:[%s3641_s6 + $0x2b8] sm:$0xff] }
 0x2b3   :  { %v1183_v13 = vmax.f32 %v1179_v12, 0.0  ;;  %v2184_v12 = vld [vmem:[%s3641_s6 + $0x2b0] sm:$0xff] }
 0x2b5   :  { %1188 = vst.msk [vmem:[#allocation4 + $0x10] sm:$0xff] %vm1185_vm7, %v1183_v13 }
 0x2bc   :  { %v1193_v16 = vld [vmem:[#allocation4 + $0x1] ss:$16 sm:$0x3]  ;;  %v1190_v17 = vld [vmem:[#allocation4] ss:$16 sm:$0x3] }
 0x2bd   :  { %2904 = vmatmul.mubr.msk.f32.vlgmr.msra.gmra.mxu1 %vm1185_vm7, %v1193_v16  ;;  %2909 = vmatmul.mubr.msk.f32.vlgmr.msra.gmra.mxu0 %vm1185_vm7, %v1190_v17  ;;  %v1348_v20 = vld [vmem:[#allocation4 + $0x2] ss:$16 sm:$0x3]  ;;  %v1428_v21 = vld [vmem:[#allocation4 + $0x3] ss:$16 sm:$0x3] }
 0x2be   :  { %2912 = vmatpush3.msk.msra.mxu1 %vm86_vm0, %v1349_v14  ;;  %2913 = vmatprep.mubr.msk.f32.mxu1 %vm3048_vm6, %v3047_v48  ;;  %v1508_v24 = vld [vmem:[#allocation4 + $0x4] ss:$16 sm:$0x3]  ;;  %v1588_v25 = vld [vmem:[#allocation4 + $0x5] ss:$16 sm:$0x3] }
 0x2bf   :  { %2917 = vmatpush3.msk.msra.mxu0 %vm86_vm0, %v1429_v15  ;;  %2918 = vmatprep.mubr.msk.f32.mxu0 %vm3048_vm6, %v3047_v48  ;;  %v1668_v29 = vld [vmem:[#allocation4 + $0x6] ss:$16 sm:$0x3]  ;;  %v2183_v14 = vld [vmem:[%s3641_s6 + $0x2a8] sm:$0xff] }
 0x2c0   :  { %2921 = vmatprep.subr.mxu1 %v3047_v48  ;;  %2926 = vmatprep.subr.mxu0 %v3047_v48 }
 0x2c1   :  { %2914 = vmatmul.mubr.msk.f32.vlgmr.msra.gmra.mxu1 %vm1185_vm7, %v1348_v20  ;;  %2919 = vmatmul.mubr.msk.f32.vlgmr.msra.gmra.mxu0 %vm1185_vm7, %v1428_v21  ;;  %v2180_v20 = vld [vmem:[%s3641_s6 + $0x290] sm:$0xff]  ;;  %v2179_v21 = vld [vmem:[%s3641_s6 + $0x288] sm:$0xff] }
 0x2c2   :  { %2922 = vmatpush3.msk.msra.mxu1 %vm86_vm0, %v1509_v18  ;;  %2923 = vmatprep.mubr.msk.f32.mxu1 %vm3048_vm6, %v3047_v48  ;;  %v2182_v18 = vld [vmem:[%s3641_s6 + $0x2a0] sm:$0xff] }
 0x2c3   :  { %2927 = vmatpush3.msk.msra.mxu0 %vm86_vm0, %v1589_v19  ;;  %2928 = vmatprep.mubr.msk.f32.mxu0 %vm3048_vm6, %v3047_v48  ;;  %v2181_v19 = vld [vmem:[%s3641_s6 + $0x298] sm:$0xff] }
 0x2c4   :  { %2931 = vmatprep.subr.mxu1 %v3047_v48  ;;  %2936 = vmatprep.subr.mxu0 %v3047_v48 }
 0x2c5   :  { %2924 = vmatmul.mubr.msk.f32.vlgmr.msra.gmra.mxu1 %vm1185_vm7, %v1508_v24  ;;  %2929 = vmatmul.mubr.msk.f32.vlgmr.msra.gmra.mxu0 %vm1185_vm7, %v1588_v25 }
 0x2c6   :  { %2932 = vmatpush3.msk.msra.mxu1 %vm86_vm0, %v1669_v22  ;;  %2933 = vmatprep.mubr.msk.f32.mxu1 %vm3048_vm6, %v3047_v48  ;;  %v2546_v22 = vld [vmem:[%s3641_s6 + $0x258] ss:$0 sm:$0xff] }
 0x2c7   :  { %2943 = vmatprep.subr.mxu1 %v3047_v48  ;;  %2937 = vmatpush3.msk.msra.mxu0 %vm1772_vm8, %v1767_v23  ;;  %v1930_v23 = vpop.permute.xlu0 %1929 }
 0x2c8   :  { %2938 = vmatprep.subr.mxu0 %v3047_v48  ;;  %2940 = vmatprep.mubr.msk.f32.mxu0 %vm3048_vm6, %v3047_v48  ;;  %v1936_v24 = vmul.f32 %v2546_v22, %v1930_v23 }
 0x2c9   :  { %2934 = vmatmul.mubr.msk.f32.vlgmr.msra.gmra.mxu1 %vm1185_vm7, %v1668_v29  ;;  %2939 = vmatpush3.msra.mxu0 %v1766_v26 }
 0x2ca   :  { %2944 = vmatpush3.msk.msra.mxu1 %vm1850_vm9, %v1764_v27  ;;  %2941 = vmatmul.mubr.msk.f32.vlgmr.msra.gmra.mxu0 %vm1768_vm10, %v1765_v28 }
 0x2cb   :  { %2945 = vmatprep.subr.mxu1 %v3047_v48  ;;  %2953 = vmatprep.mubr.msk.f32.mxu1 %vm3048_vm6, %v3047_v48 }
 0x2cc   :  { %2946 = vmatpush3.msra.mxu1 %v1763_v30  ;;  %2956 = vmatprep.subr.mxu0 %v3047_v48  ;;  %v2550_v30 = vld [vmem:[%s3641_s6 + $0x280] ss:$0 sm:$0xff] }
 0x2cd   :  { %2947 = vmatprep.subr.mxu1 %v3047_v48  ;;  %2960 = vmatprep.mubr.msk.f32.mxu0 %vm3048_vm6, %v3047_v48 }
 0x2ce   :  { %2948 = vmatpush3.msra.mxu1 %v1762_v31  ;;  %2957 = vmatpush3.msra.mxu0 %v1938_v35 }
 0x2cf   :  { %2949 = vmatprep.subr.mxu1 %v3047_v48  ;;  %2958 = vmatprep.subr.mxu0 %v3047_v48 }
 0x2d0   :  { %2950 = vmatpush3.msra.mxu1 %v1761_v32  ;;  %2959 = vmatpush3.msra.mxu0 %v1937_v36 }
 0x2d1   :  { %2951 = vmatprep.subr.mxu1 %v3047_v48  ;;  %2963 = vmatprep.subr.mxu0 %v3047_v48 }
 0x2d2   :  { %2952 = vmatpush3.msra.mxu1 %v1760_v33 }
 0x2d3   :  { %2954 = vmatmul.mubr.msk.f32.vlgmr.msra.gmra.mxu1 %vm1846_vm11, %v1759_v34  ;;  %2968 = vmatprep.subr.mxu1 %v3047_v48 }
 0x2d4   :  { %2970 = vmatprep.mubr.msk.f32.mxu1 %vm3048_vm6, %v3047_v48  ;;  %2969 = vmatpush3.msra.mxu1 %v2092_v37 }
 0x2d5   :  { %2982 = vmatprep.subr.mxu1 %v3047_v48 }
 0x2d7   :  { %2971 = vmatmul.mubr.msk.f32.vlgmr.msra.gmra.mxu1 %vm2016_vm12, %v2091_v38 }
 0x2d8   :  { %2990 = vmatprep.mubr.msk.f32.mxu1 %vm3048_vm6, %v3047_v48  ;;  %2983 = vmatpush3.msra.mxu1 %v2182_v18 }
 0x2d9   :  { %2984 = vmatprep.subr.mxu1 %v3047_v48 }
 0x2da   :  { %2985 = vmatpush3.msra.mxu1 %v2181_v19 }
 0x2db   :  { %2986 = vmatprep.subr.mxu1 %v3047_v48 }
 0x2dc   :  { %2987 = vmatpush3.msra.mxu1 %v2180_v20 }
 0x2dd   :  { %2988 = vmatprep.subr.mxu1 %v3047_v48 }
 0x2de   :  { %2989 = vmatpush3.msra.mxu1 %v2179_v21 }
 0x37d   :  { %v1267_v41 = vpop.f32.mrf.mxu1  ;;  %v1343_v42 = vpop.f32.mrf.mxu0 }
 0x37e   :  { %v1344_v45 = vadd.f32 %v1343_v42, %v1267_v41  ;;  %v2350_v41 = vld [vmem:[%s3641_s6 + $0x2f0] sm:$0xff]  ;;  %v2349_v42 = vld [vmem:[%s3641_s6 + $0x2e8] sm:$0xff] }
 0x37f   :  { %v2905_v43 = vpop.f32.mrf.mxu1  ;;  %v2910_v44 = vpop.f32.mrf.mxu0 }
 0x380   :  { %v2348_v43 = vld [vmem:[%s3641_s6 + $0x2e0] sm:$0xff]  ;;  %v2347_v44 = vld [vmem:[%s3641_s6 + $0x2d8] sm:$0xff] }
 0x381   :  { %v1422_v46 = vpop.f32.mrf.mxu1  ;;  %v1502_v47 = vpop.f32.mrf.mxu0 }
 0x382   :  { %v1426_v49 = vadd.f32 %v1422_v46, %v1344_v45  ;;  %v2346_v45 = vld [vmem:[%s3641_s6 + $0x2d0] sm:$0xff]  ;;  %v2345_v46 = vld [vmem:[%s3641_s6 + $0x2c8] sm:$0xff] }
 0x383   :  { %v2915_v50 = vpop.f32.mrf.mxu1  ;;  %v2920_v51 = vpop.f32.mrf.mxu0 }
 0x384   :  { %v1506_v52 = vadd.f32 %v1502_v47, %v1426_v49  ;;  %v2554_v49 = vld [vmem:[%s3641_s6 + $0x2c0] ss:$0 sm:$0xff] }
 0x385   :  { %v1582_v53 = vpop.f32.mrf.mxu1  ;;  %v1662_v54 = vpop.f32.mrf.mxu0 }
 0x386   :  { %v1586_v55 = vadd.f32 %v1582_v53, %v1506_v52 }
 0x387   :  { %v2925_v56 = vpop.f32.mrf.mxu1  ;;  %v2930_v57 = vpop.f32.mrf.mxu0 }
 0x388   :  { %v1666_v58 = vadd.f32 %v1662_v54, %v1586_v55 }
 0x389   :  { %v1742_v59 = vpop.f32.mrf.mxu1 }
 0x38a   :  { %v1746_v60 = vadd.f32 %v1742_v59, %v1666_v58  ;;  %v1842_v62 = vpop.f32.mrf.mxu0 }
 0x38b   :  { %v2935_v63 = vpop.f32.mrf.mxu1 }
 0x38c   :  { %v2942_v0 = vpop.f32.mrf.mxu0  ;;  %v1752_v1 = vadd.f32 %v2540_v61, %v1746_v60 }
 0x38e   :  { %v1754_v2 = vmin.f32 %v1752_v1, 0.0  ;;  %vm1753_vm14 = vcmp.gt.f32.partialorder %v1752_v1, 0.0 }
 0x390   :  { %v1755_v5 = vmul.f32 1.442695, %v1754_v2 }
 0x393   :  { %v1920_v3 = vpop.f32.mrf.mxu1 }
 0x394   :  { %v1921_v4 = vadd.f32 %v1920_v3, %v1842_v62 }
 0x395   :  { %v2955_v6 = vpop.f32.mrf.mxu1 }
 0x396   :  { %3013 = vtanh.f32 %v1921_v4 }
 0x397   :  { %3015 = vpow2.f32 %v1755_v5  ;;  %v2162_v16 = vpop.f32.mrf.mxu1 }
 0x399   :  { %v2972_v17 = vpop.f32.mrf.mxu1 }
 0x3a3   :  { %v3014_v8 = vpop.eup %3013 }
 0x3a4   :  { %2961 = vmatmul.mubr.msk.f32.vlgmr.msra.gmra.mxu0 %vm1939_vm13, %v3014_v8  ;;  %v3016_v10 = vpop.eup %3015 }
 0x3a5   :  { %2964 = vmatpush3.msra.mxu0 %v2015_v7  ;;  %2965 = vmatprep.mubr.msk.f32.mxu0 %vm3048_vm6, %v3047_v48  ;;  %v2541_v13 = vadd.f32 -1.0, %v3016_v10 }
 0x3a6   :  { %2973 = vmatprep.subr.mxu0 %v3047_v48 }
 0x3a7   :  { %v1758_v15 = vsel %vm1753_vm14, %v1752_v1, %v2541_v13 }
 0x3a8   :  { %2966 = vmatmul.mubr.msk.f32.vlgmr.msra.gmra.mxu0 %vm2016_vm12, %v2014_v9 }
 0x3a9   :  { %2974 = vmatpush3.msra.mxu0 %v2185_v11  ;;  %2979 = vmatprep.mubr.msk.f32.mxu0 %vm3048_vm6, %v3047_v48 }
 0x3aa   :  { %2975 = vmatprep.subr.mxu0 %v3047_v48 }
 0x3ab   :  { %2976 = vmatpush3.msra.mxu0 %v2184_v12 }
 0x3ac   :  { %2977 = vmatprep.subr.mxu0 %v3047_v48 }
 0x3ad   :  { %2978 = vmatpush3.msra.mxu0 %v2183_v14 }
 0x3ae   :  { %2980 = vmatmul.mubr.msk.f32.vlgmr.msra.gmra.mxu0 %vm959_vm5, %v1758_v15  ;;  %2993 = vmatprep.subr.mxu0 %v3047_v48 }
 0x3af   :  { %3005 = vmatprep.mubr.msk.f32.mxu0 %vm3048_vm6, %v3047_v48  ;;  %2994 = vmatpush3.msra.mxu0 %v2350_v41 }
 0x3b0   :  { %2995 = vmatprep.subr.mxu0 %v3047_v48 }
 0x3b1   :  { %2996 = vmatpush3.msra.mxu0 %v2349_v42 }
 0x3b2   :  { %2997 = vmatprep.subr.mxu0 %v3047_v48 }
 0x3b3   :  { %2998 = vmatpush3.msra.mxu0 %v2348_v43 }
 0x3b4   :  { %2999 = vmatprep.subr.mxu0 %v3047_v48 }
 0x3b5   :  { %3000 = vmatpush3.msra.mxu0 %v2347_v44 }
 0x3b6   :  { %3001 = vmatprep.subr.mxu0 %v3047_v48 }
 0x3b7   :  { %3002 = vmatpush3.msra.mxu0 %v2346_v45 }
 0x3b8   :  { %3003 = vmatprep.subr.mxu0 %v3047_v48  ;;  %v2556_v48 = vld [vmem:[%s3641_s6 + $0x2f8] ss:$0 sm:$0xff]  ;;  %s3025_s6 = scalar_lea.vmem %s2450_s5, 32 }
 0x3b9   :  { %3004 = vmatpush3.msra.mxu0 %v2345_v46  ;;  %p3026_p0 = scmp.ne.s32.totalorder %s2450_s5, %s3025_s6  ;;  %p3031_p2 = scmp.lt.s32.totalorder %s3025_s6, %s3025_s6 }
 0x3bb   :  { %p3032_p3 = por %p3031_p2, %p3030_p1 }
 0x3bd   :  { %p3033_p4 = pnand %p3032_p3, %p3026_p0 }
 0x464   :  { %v2009_v25 = vpop.f32.mrf.mxu0 }
 0x465   :  { %v2013_v27 = vadd.f32 %v2009_v25, %v1936_v24 }
 0x466   :  { %v2962_v26 = vpop.f32.mrf.mxu0 }
 0x468   :  { %v2086_v28 = vpop.f32.mrf.mxu0 }
 0x469   :  { %v2090_v29 = vadd.f32 %v2086_v28, %v2013_v27 }
 0x46a   :  { %v2967_v31 = vpop.f32.mrf.mxu0 }
 0x46b   :  { %v2166_v32 = vadd.f32 %v2162_v16, %v2090_v29 }
 0x46d   :  { %v2172_v33 = vadd.f32 %v2550_v30, %v2166_v32 }
 0x46e   :  { %v2255_v34 = vpop.f32.mrf.mxu0 }
 0x46f   :  { %v2174_v35 = vmin.f32 %v2172_v33, 0.0  ;;  %vm2173_vm0 = vcmp.gt.f32.partialorder %v2172_v33, 0.0 }
 0x470   :  { %v2981_v36 = vpop.f32.mrf.mxu0 }
 0x471   :  { %v2175_v37 = vmul.f32 1.442695, %v2174_v35 }
 0x473   :  { %3017 = vpow2.f32 %v2175_v37 }
 0x480   :  { %v3018_v38 = vpop.eup %3017 }
 0x481   :  { %v2551_v39 = vadd.f32 -1.0, %v3018_v38 }
 0x483   :  { %v2178_v40 = vsel %vm2173_vm0, %v2172_v33, %v2551_v39 }
 0x484   :  { %2991 = vmatmul.mubr.msk.f32.vlgmr.msra.gmra.mxu1 %vm2259_vm15, %v2178_v40 }
 0x544   :  { %v2329_v47 = vpop.f32.mrf.mxu1 }
 0x545   :  { %v2330_v50 = vadd.f32 %v2329_v47, %v2255_v34 }
 0x546   :  { %v2992_v51 = vpop.f32.mrf.mxu1 }
 0x547   :  { %v2338_v52 = vadd.f32 %v2554_v49, %v2330_v50 }
 0x549   :  { %v2340_v53 = vmin.f32 %v2338_v52, 0.0  ;;  %vm2339_vm2 = vcmp.gt.f32.partialorder %v2338_v52, 0.0 }
 0x54b   :  { %v2341_v54 = vmul.f32 1.442695, %v2340_v53 }
 0x54d   :  { %3019 = vpow2.f32 %v2341_v54 }
 0x55a   :  { %v3020_v55 = vpop.eup %3019 }
 0x55b   :  { %v2555_v56 = vadd.f32 -1.0, %v3020_v55 }
 0x55d   :  { %v2344_v57 = vsel %vm2339_vm2, %v2338_v52, %v2555_v56 }
 0x55e   :  { %3006 = vmatmul.mubr.msk.f32.vlgmr.msra.gmra.mxu0 %vm2356_vm1, %v2344_v57 }
 0x61e   :  { %v2426_v58 = vpop.f32.mrf.mxu0 }
 0x61f   :  { %v2427_v59 = vadd.f32 %v2556_v48, %v2426_v58 }
 0x620   :  { %v3007_v60 = vpop.f32.mrf.mxu0 }
 0x621   :  { %v2431_v61 = vsel %vm2430_vm3, %v2427_v59, -inf }
 0x622   :  { %2432 = vmax.xlane.f32.xlu0 %v2431_v61 }
 0x6ab   :  { %v2433_v62 = vpop.xlane.xlu0 %2432 }
 0x6ac   :  { %v2434_v63 = vsub.f32 %v2427_v59, %v2433_v62 }
 0x6ae   :  { %v2435_v0 = vmul.f32 1.442695, %v2434_v63 }
 0x6b0   :  { %3021 = vpow2.f32 %v2435_v0 }
 0x6bd   :  { %v3022_v1 = vpop.eup %3021 }
 0x6be   :  { %v2437_v2 = vsel %vm2430_vm3, %v3022_v1, 0.0 }
 0x6bf   :  { %2438 = vadd.xlane.f32.xlu1 %v2437_v2 }
 0x748   :  { %v2439_v3 = vpop.xlane.xlu1 %2438 }
 0x749   :  { %3023 = vrcp.f32 %v2439_v3 }
 0x756   :  { %v3024_v4 = vpop.eup %3023 }
 0x757   :  { %v2441_v5 = vmul.f32 %v3024_v4, %v3022_v1 }
 0x759   :  { %2442 = vst.msk [vmem:[#allocation5] sm:$0x3] %vm2430_vm3, %v2441_v5 }
 0x75a   :  { %3036 = shalt.err (!%p3033_p4)
}
 0x75b   :  { %2452 = dma.vmem_to_hbm [thread:$0]  %s2450_s5, 32, %s3642_s7, [#allocation6]  }
 0x75c   :  { %3045 = dma.done.wait [#allocation6], 32  }
 0x75d   :  { %3046 = vsyncadd [#allocation6], 4294967264 }
 0x75e   :  { %2456 = vsyncpa [#allocation6], 1 }

</bundles_post_ra>
